<compile_context>
chip_gen: v5e
topology: v5e:2x2
jax: 0.10.0
libtpu: 0.0.40
codegen_flags: <defaults>
</compile_context>

<pallas_src>
import functools

import jax
import jax.numpy as jnp
from jax import lax
from jax.experimental import pallas as pl
from jax.experimental.pallas import tpu as pltpu


def _sent_encoder_kernel(x_ref, w1_ref, b1_ref, w2_ref, b2_ref, out_ref,
                         xp_ref, h1p_ref):
    # x_ref  : (TB, L, E)   bf16 embedded sentences (un-padded)
    # w1_ref : (3E, C)      bf16, im2col layout: w1_f[k*E + e, c] = torch_w1[c, e, k]
    # b1_ref : (1, C)       f32
    # w2_ref : (3C, C)      bf16
    # b2_ref : (1, C)       f32
    # out_ref: (TB, 2C)     f32
    # xp_ref : (TB, L+2, E) f32 VMEM scratch (time-padded input)
    # h1p_ref: (TB, L+2, C) f32 VMEM scratch (time-padded conv1 activations)
    TB, L, E = x_ref.shape
    C = w2_ref.shape[1]

    # ---- 'same' zero padding of the time axis, in VMEM scratch ----
    # Border rows are re-zeroed every step (2 rows, negligible) so correctness
    # does not depend on cross-step scratch persistence (safe under megacore
    # sharding of the parallel grid axis on v7x).
    xp_ref[:, 0:1, :] = jnp.zeros((TB, 1, E), jnp.float32)
    xp_ref[:, L + 1:L + 2, :] = jnp.zeros((TB, 1, E), jnp.float32)
    xp_ref[:, 1:L + 1, :] = x_ref[...].astype(jnp.float32)

    # ---- conv1: im2col + single MXU matmul (TB*L, 3E) @ (3E, C), ReLU ----
    x_win = jnp.concatenate(
        [xp_ref[:, 0:L, :], xp_ref[:, 1:L + 1, :], xp_ref[:, 2:L + 2, :]],
        axis=-1).reshape(TB * L, 3 * E)
    a1 = jnp.dot(x_win.astype(w1_ref.dtype), w1_ref[...],
                 preferred_element_type=jnp.float32)
    h1 = jnp.maximum(a1 + b1_ref[...], 0.0)            # (TB*L, C) f32

    # ---- conv2: pad h1 in scratch, im2col (TB*L, 3C) @ (3C, C), ReLU ----
    h1p_ref[:, 0:1, :] = jnp.zeros((TB, 1, C), jnp.float32)
    h1p_ref[:, L + 1:L + 2, :] = jnp.zeros((TB, 1, C), jnp.float32)
    h1p_ref[:, 1:L + 1, :] = h1.reshape(TB, L, C)
    h_win = jnp.concatenate(
        [h1p_ref[:, 0:L, :], h1p_ref[:, 1:L + 1, :], h1p_ref[:, 2:L + 2, :]],
        axis=-1).reshape(TB * L, 3 * C)
    a2 = jnp.dot(h_win.astype(w2_ref.dtype), w2_ref[...],
                 preferred_element_type=jnp.float32)
    h2 = jnp.maximum(a2 + b2_ref[...], 0.0)            # (TB*L, C) f32

    # ---- max-pool over time; store both halves of the (TB, 2C) block ----
    out_ref[:, 0:C] = jnp.max(h1.reshape(TB, L, C), axis=1)
    out_ref[:, C:2 * C] = jnp.max(h2.reshape(TB, L, C), axis=1)


def sent_encoder_forward(sent, emb_table, w1, b1, w2, b2, *,
                         block_b=16, matmul_dtype=jnp.bfloat16):
    """sent: (B, L) int32 tokens. Returns (B, 2*C) f32 sentence embeddings."""
    B, L = sent.shape
    E = emb_table.shape[1]
    C = w1.shape[0]

    # Embedding lookup (frozen nn.Embedding) stays as an XLA gather; bf16 cast
    # halves the activation bytes DMA'd into the kernel.
    # TODO(synk): fuse the gather into the kernel (scalar-prefetch token ids +
    # per-row DMA from emb_table kept in pl.ANY) to drop one HBM round trip.
    x = emb_table[sent].astype(matmul_dtype)            # (B, L, E)

    # Batch tiling: TB sentences per grid step.
    TB = B if B < block_b else block_b
    B_pad = -(-B // TB) * TB
    if B_pad != B:
        x = jnp.pad(x, ((0, B_pad - B), (0, 0), (0, 0)))
    grid = (B_pad // TB,)

    # torch Conv1d weight (C_out, C_in, K) -> im2col layout (K*C_in, C_out).
    w1_f = jnp.transpose(w1, (2, 1, 0)).reshape(3 * E, C).astype(matmul_dtype)
    w2_f = jnp.transpose(w2, (2, 1, 0)).reshape(3 * C, C).astype(matmul_dtype)
    b1_r = b1.reshape(1, C).astype(jnp.float32)
    b2_r = b2.reshape(1, C).astype(jnp.float32)

    out = pl.pallas_call(
        _sent_encoder_kernel,
        out_shape=jax.ShapeDtypeStruct((B_pad, 2 * C), jnp.float32),
        grid_spec=pltpu.PrefetchScalarGridSpec(
            num_scalar_prefetch=0,
            grid=grid,
            in_specs=[
                pl.BlockSpec((TB, L, E), lambda i: (i, 0, 0)),      # x
                pl.BlockSpec((3 * E, C), lambda i: (0, 0)),          # w1 (im2col)
                pl.BlockSpec((1, C), lambda i: (0, 0)),              # b1
                pl.BlockSpec((3 * C, C), lambda i: (0, 0)),          # w2 (im2col)
                pl.BlockSpec((1, C), lambda i: (0, 0)),              # b2
            ],
            out_specs=pl.BlockSpec((TB, 2 * C), lambda i: (i, 0)),
            scratch_shapes=[
                pltpu.VMEM((TB, L + 2, E), jnp.float32),   # padded input
                pltpu.VMEM((TB, L + 2, C), jnp.float32),   # padded conv1 act
            ],
        ),
        compiler_params=pltpu.CompilerParams(
            dimension_semantics=("parallel",)),
    )(x, w1_f, b1_r, w2_f, b2_r)
    return out[:B]


def _reference_forward(sent, emb_table, w1, b1, w2, b2, matmul_dtype=None):
    """Pure-JAX reference matching the PyTorch module (NCW conv1d).

    If matmul_dtype is given, the conv inputs/weights are rounded to that dtype
    (then computed in f32) to mirror the kernel's bf16 MXU operands.
    """
    def rnd(a):
        if matmul_dtype is None:
            return a
        return a.astype(matmul_dtype).astype(jnp.float32)

    x = rnd(emb_table[sent])                         # (B, L, E)
    x = jnp.transpose(x, (0, 2, 1))                  # (B, E, L) == NCW

    def conv1d_same(inp, w, b):
        out = lax.conv_general_dilated(
            inp, w, window_strides=(1,), padding="SAME",
            dimension_numbers=("NCH", "OIH", "NCH"),
            precision=lax.Precision.HIGHEST)
        return out + b[None, :, None]

    h1 = jax.nn.relu(conv1d_same(x, rnd(w1), b1))    # (B, C, L)
    h2 = jax.nn.relu(conv1d_same(rnd(h1), rnd(w2), b2))
    pool1 = jnp.max(h1, axis=2)
    pool2 = jnp.max(h2, axis=2)
    return jnp.concatenate([pool1, pool2], axis=1)


if __name__ == "__main__":
    # Small synthetic configuration consistent with the module.
    VOCAB = 20      # token_size
    E = 32          # pretrained embedding dim
    C = 32          # configs['conv_dim']
    B = 32          # batch  (2 grid steps of 16 -> both v7x TensorCores busy)
    L = 8           # sequence length

    key = jax.random.PRNGKey(0)
    k_emb, k_w1, k_b1, k_w2, k_b2, k_tok = jax.random.split(key, 6)

    emb_table = jax.random.normal(k_emb, (VOCAB, E), dtype=jnp.float32)
    w1 = 0.1 * jax.random.normal(k_w1, (C, E, 3), dtype=jnp.float32)  # torch layout
    b1 = 0.1 * jax.random.normal(k_b1, (C,), dtype=jnp.float32)
    w2 = 0.1 * jax.random.normal(k_w2, (C, C, 3), dtype=jnp.float32)
    b2 = 0.1 * jax.random.normal(k_b2, (C,), dtype=jnp.float32)

    sent = jax.random.randint(k_tok, (B, L), 0, VOCAB, dtype=jnp.int32)

    fwd = jax.jit(functools.partial(sent_encoder_forward))
    out = jax.block_until_ready(fwd(sent, emb_table, w1, b1, w2, b2))
    assert out.shape == (B, 2 * C)

    # Tight check vs. a reference that applies the same bf16 operand rounding.
    ref_matched = _reference_forward(sent, emb_table, w1, b1, w2, b2,
                                     matmul_dtype=jnp.bfloat16)
    assert jnp.allclose(out, ref_matched, rtol=1e-2, atol=1e-2), \
        "mismatch vs bf16-matched reference"

    # Loose sanity check vs. the pure-f32 PyTorch-equivalent reference.
    ref_f32 = _reference_forward(sent, emb_table, w1, b1, w2, b2)
    assert jnp.allclose(out, ref_f32, rtol=1e-1, atol=1e-1), \
        "mismatch vs f32 reference"

    print("KERNEL_OK")
</pallas_src>

<mosaic_0001>
module attributes {stable_mosaic.version = 11 : i64} {
  func.func @_sent_encoder_kernel(%arg0: i32, %arg1: memref<16x8x32xbf16, #tpu.memory_space<vmem>>, %arg2: memref<96x32xbf16, #tpu.memory_space<vmem>>, %arg3: memref<1x32xf32, #tpu.memory_space<vmem>>, %arg4: memref<96x32xbf16, #tpu.memory_space<vmem>>, %arg5: memref<1x32xf32, #tpu.memory_space<vmem>>, %arg6: memref<16x64xf32, #tpu.memory_space<vmem>>, %arg7: memref<16x10x32xf32, #tpu.memory_space<vmem>>, %arg8: memref<16x10x32xf32, #tpu.memory_space<vmem>>) attributes {dimension_semantics = [#tpu.dimension_semantics<parallel>], iteration_bounds = array<i64: 2>, scalar_prefetch = 0 : i64, scratch_operands = 2 : i64, tpu.core_type = #tpu.core_type<tc>, window_params = [{transform_indices = @transform_0, window_bounds = array<i64: 16, 8, 32>}, {pipeline_mode = #tpu.pipeline_mode<synchronous>, transform_indices = @transform_1, window_bounds = array<i64: 96, 32>}, {pipeline_mode = #tpu.pipeline_mode<synchronous>, transform_indices = @transform_2, window_bounds = array<i64: 1, 32>}, {pipeline_mode = #tpu.pipeline_mode<synchronous>, transform_indices = @transform_3, window_bounds = array<i64: 96, 32>}, {pipeline_mode = #tpu.pipeline_mode<synchronous>, transform_indices = @transform_4, window_bounds = array<i64: 1, 32>}, {transform_indices = @transform_5, window_bounds = array<i64: 16, 64>}]} {
    %cst = arith.constant 0.000000e+00 : f32
    %0 = vector.broadcast %cst : f32 to vector<16x1x32xf32>
    %c0 = arith.constant 0 : index
    %c0_0 = arith.constant 0 : index
    %c0_1 = arith.constant 0 : index
    %1 = vector.load %arg7[%c0, %c0_0, %c0_1] : memref<16x10x32xf32, #tpu.memory_space<vmem>>, vector<16x1x32xf32>
    tpu.vector_store %arg7[%c0, %c0_0, %c0_1], %0 {strides = array<i32>} : memref<16x10x32xf32, #tpu.memory_space<vmem>>, vector<16x1x32xf32>,
    %cst_2 = arith.constant 0.000000e+00 : f32
    %2 = vector.broadcast %cst_2 : f32 to vector<16x1x32xf32>
    %c0_3 = arith.constant 0 : index
    %c9 = arith.constant 9 : index
    %c0_4 = arith.constant 0 : index
    %3 = vector.load %arg7[%c0_3, %c9, %c0_4] : memref<16x10x32xf32, #tpu.memory_space<vmem>>, vector<16x1x32xf32>
    tpu.vector_store %arg7[%c0_3, %c9, %c0_4], %2 {strides = array<i32>} : memref<16x10x32xf32, #tpu.memory_space<vmem>>, vector<16x1x32xf32>,
    %c0_5 = arith.constant 0 : index
    %c0_6 = arith.constant 0 : index
    %c0_7 = arith.constant 0 : index
    %4 = vector.load %arg1[%c0_5, %c0_6, %c0_7] : memref<16x8x32xbf16, #tpu.memory_space<vmem>>, vector<16x8x32xbf16>
    %5 = arith.extf %4 : vector<16x8x32xbf16> to vector<16x8x32xf32>
    %c0_8 = arith.constant 0 : index
    %c1 = arith.constant 1 : index
    %c0_9 = arith.constant 0 : index
    %6 = vector.load %arg7[%c0_8, %c1, %c0_9] : memref<16x10x32xf32, #tpu.memory_space<vmem>>, vector<16x8x32xf32>
    tpu.vector_store %arg7[%c0_8, %c1, %c0_9], %5 {strides = array<i32>} : memref<16x10x32xf32, #tpu.memory_space<vmem>>, vector<16x8x32xf32>,
    %c0_10 = arith.constant 0 : index
    %c0_11 = arith.constant 0 : index
    %c0_12 = arith.constant 0 : index
    %7 = vector.load %arg7[%c0_10, %c0_11, %c0_12] : memref<16x10x32xf32, #tpu.memory_space<vmem>>, vector<16x8x32xf32>
    %c0_13 = arith.constant 0 : index
    %c1_14 = arith.constant 1 : index
    %c0_15 = arith.constant 0 : index
    %8 = vector.load %arg7[%c0_13, %c1_14, %c0_15] : memref<16x10x32xf32, #tpu.memory_space<vmem>>, vector<16x8x32xf32>
    %c0_16 = arith.constant 0 : index
    %c2 = arith.constant 2 : index
    %c0_17 = arith.constant 0 : index
    %9 = vector.load %arg7[%c0_16, %c2, %c0_17] : memref<16x10x32xf32, #tpu.memory_space<vmem>>, vector<16x8x32xf32>
    %10 = tpu.concatenate %7, %8, %9 in 2 : vector<16x8x32xf32>, vector<16x8x32xf32>, vector<16x8x32xf32> -> vector<16x8x96xf32>
    %11 = vector.shape_cast %10 : vector<16x8x96xf32> to vector<128x96xf32>
    %12 = arith.truncf %11 : vector<128x96xf32> to vector<128x96xbf16>
    %c0_18 = arith.constant 0 : index
    %c0_19 = arith.constant 0 : index
    %13 = vector.load %arg2[%c0_18, %c0_19] : memref<96x32xbf16, #tpu.memory_space<vmem>>, vector<96x32xbf16>
    %cst_20 = arith.constant dense<0.000000e+00> : vector<128x32xf32>
    %14 = tpu.matmul %12, %13, %cst_20 {dimension_numbers = #tpu.dot_dimension_numbers<[1], [0], [0], [1], [0, 0, 1, 1], [], []>} : vector<128x96xbf16>, vector<96x32xbf16>, vector<128x32xf32> -> vector<128x32xf32>
    %c0_21 = arith.constant 0 : index
    %c0_22 = arith.constant 0 : index
    %15 = vector.load %arg3[%c0_21, %c0_22] : memref<1x32xf32, #tpu.memory_space<vmem>>, vector<1x32xf32>
    %16 = vector.broadcast %15 : vector<1x32xf32> to vector<128x32xf32>
    %17 = arith.addf %14, %16 : vector<128x32xf32>
    %cst_23 = arith.constant 0.000000e+00 : f32
    %18 = vector.broadcast %cst_23 : f32 to vector<128x32xf32>
    %19 = arith.maximumf %17, %18 : vector<128x32xf32>
    %cst_24 = arith.constant 0.000000e+00 : f32
    %20 = vector.broadcast %cst_24 : f32 to vector<16x1x32xf32>
    %c0_25 = arith.constant 0 : index
    %c0_26 = arith.constant 0 : index
    %c0_27 = arith.constant 0 : index
    %21 = vector.load %arg8[%c0_25, %c0_26, %c0_27] : memref<16x10x32xf32, #tpu.memory_space<vmem>>, vector<16x1x32xf32>
    tpu.vector_store %arg8[%c0_25, %c0_26, %c0_27], %20 {strides = array<i32>} : memref<16x10x32xf32, #tpu.memory_space<vmem>>, vector<16x1x32xf32>,
    %cst_28 = arith.constant 0.000000e+00 : f32
    %22 = vector.broadcast %cst_28 : f32 to vector<16x1x32xf32>
    %c0_29 = arith.constant 0 : index
    %c9_30 = arith.constant 9 : index
    %c0_31 = arith.constant 0 : index
    %23 = vector.load %arg8[%c0_29, %c9_30, %c0_31] : memref<16x10x32xf32, #tpu.memory_space<vmem>>, vector<16x1x32xf32>
    tpu.vector_store %arg8[%c0_29, %c9_30, %c0_31], %22 {strides = array<i32>} : memref<16x10x32xf32, #tpu.memory_space<vmem>>, vector<16x1x32xf32>,
    %24 = vector.shape_cast %19 : vector<128x32xf32> to vector<16x8x32xf32>
    %c0_32 = arith.constant 0 : index
    %c1_33 = arith.constant 1 : index
    %c0_34 = arith.constant 0 : index
    %25 = vector.load %arg8[%c0_32, %c1_33, %c0_34] : memref<16x10x32xf32, #tpu.memory_space<vmem>>, vector<16x8x32xf32>
    tpu.vector_store %arg8[%c0_32, %c1_33, %c0_34], %24 {strides = array<i32>} : memref<16x10x32xf32, #tpu.memory_space<vmem>>, vector<16x8x32xf32>,
    %c0_35 = arith.constant 0 : index
    %c0_36 = arith.constant 0 : index
    %c0_37 = arith.constant 0 : index
    %26 = vector.load %arg8[%c0_35, %c0_36, %c0_37] : memref<16x10x32xf32, #tpu.memory_space<vmem>>, vector<16x8x32xf32>
    %c0_38 = arith.constant 0 : index
    %c1_39 = arith.constant 1 : index
    %c0_40 = arith.constant 0 : index
    %27 = vector.load %arg8[%c0_38, %c1_39, %c0_40] : memref<16x10x32xf32, #tpu.memory_space<vmem>>, vector<16x8x32xf32>
    %c0_41 = arith.constant 0 : index
    %c2_42 = arith.constant 2 : index
    %c0_43 = arith.constant 0 : index
    %28 = vector.load %arg8[%c0_41, %c2_42, %c0_43] : memref<16x10x32xf32, #tpu.memory_space<vmem>>, vector<16x8x32xf32>
    %29 = tpu.concatenate %26, %27, %28 in 2 : vector<16x8x32xf32>, vector<16x8x32xf32>, vector<16x8x32xf32> -> vector<16x8x96xf32>
    %30 = vector.shape_cast %29 : vector<16x8x96xf32> to vector<128x96xf32>
    %31 = arith.truncf %30 : vector<128x96xf32> to vector<128x96xbf16>
    %c0_44 = arith.constant 0 : index
    %c0_45 = arith.constant 0 : index
    %32 = vector.load %arg4[%c0_44, %c0_45] : memref<96x32xbf16, #tpu.memory_space<vmem>>, vector<96x32xbf16>
    %cst_46 = arith.constant dense<0.000000e+00> : vector<128x32xf32>
    %33 = tpu.matmul %31, %32, %cst_46 {dimension_numbers = #tpu.dot_dimension_numbers<[1], [0], [0], [1], [0, 0, 1, 1], [], []>} : vector<128x96xbf16>, vector<96x32xbf16>, vector<128x32xf32> -> vector<128x32xf32>
    %c0_47 = arith.constant 0 : index
    %c0_48 = arith.constant 0 : index
    %34 = vector.load %arg5[%c0_47, %c0_48] : memref<1x32xf32, #tpu.memory_space<vmem>>, vector<1x32xf32>
    %35 = vector.broadcast %34 : vector<1x32xf32> to vector<128x32xf32>
    %36 = arith.addf %33, %35 : vector<128x32xf32>
    %cst_49 = arith.constant 0.000000e+00 : f32
    %37 = vector.broadcast %cst_49 : f32 to vector<128x32xf32>
    %38 = arith.maximumf %36, %37 : vector<128x32xf32>
    %39 = vector.shape_cast %19 : vector<128x32xf32> to vector<16x8x32xf32>
    %cst_50 = arith.constant dense<0xFF800000> : vector<16x32xf32>
    %40 = vector.multi_reduction <maximumf>, %39, %cst_50 [1] : vector<16x8x32xf32> to vector<16x32xf32>
    %c0_51 = arith.constant 0 : index
    %c0_52 = arith.constant 0 : index
    %41 = vector.load %arg6[%c0_51, %c0_52] : memref<16x64xf32, #tpu.memory_space<vmem>>, vector<16x32xf32>
    tpu.vector_store %arg6[%c0_51, %c0_52], %40 {strides = array<i32>} : memref<16x64xf32, #tpu.memory_space<vmem>>, vector<16x32xf32>,
    %42 = vector.shape_cast %38 : vector<128x32xf32> to vector<16x8x32xf32>
    %cst_53 = arith.constant dense<0xFF800000> : vector<16x32xf32>
    %43 = vector.multi_reduction <maximumf>, %42, %cst_53 [1] : vector<16x8x32xf32> to vector<16x32xf32>
    %c0_54 = arith.constant 0 : index
    %c32 = arith.constant 32 : index
    %44 = vector.load %arg6[%c0_54, %c32] : memref<16x64xf32, #tpu.memory_space<vmem>>, vector<16x32xf32>
    tpu.vector_store %arg6[%c0_54, %c32], %43 {strides = array<i32>} : memref<16x64xf32, #tpu.memory_space<vmem>>, vector<16x32xf32>,
    return
  }
  func.func @transform_0(%arg0: i32) -> (i32, i32, i32) {
    %c0_i32 = arith.constant 0 : i32
    %c0_i32_0 = arith.constant 0 : i32
    %c0_i32_1 = arith.constant 0 : i32
    return %arg0, %c0_i32, %c0_i32_0 : i32, i32, i32
  }
  func.func @transform_1(%arg0: i32) -> (i32, i32) {
    %c0_i32 = arith.constant 0 : i32
    %c0_i32_0 = arith.constant 0 : i32
    %c0_i32_1 = arith.constant 0 : i32
    return %c0_i32, %c0_i32_0 : i32, i32
  }
  func.func @transform_2(%arg0: i32) -> (i32, i32) {
    %c0_i32 = arith.constant 0 : i32
    %c0_i32_0 = arith.constant 0 : i32
    %c0_i32_1 = arith.constant 0 : i32
    return %c0_i32, %c0_i32_0 : i32, i32
  }
  func.func @transform_3(%arg0: i32) -> (i32, i32) {
    %c0_i32 = arith.constant 0 : i32
    %c0_i32_0 = arith.constant 0 : i32
    %c0_i32_1 = arith.constant 0 : i32
    return %c0_i32, %c0_i32_0 : i32, i32
  }
  func.func @transform_4(%arg0: i32) -> (i32, i32) {
    %c0_i32 = arith.constant 0 : i32
    %c0_i32_0 = arith.constant 0 : i32
    %c0_i32_1 = arith.constant 0 : i32
    return %c0_i32, %c0_i32_0 : i32, i32
  }
  func.func @transform_5(%arg0: i32) -> (i32, i32) {
    %c0_i32 = arith.constant 0 : i32
    %c0_i32_0 = arith.constant 0 : i32
    return %arg0, %c0_i32 : i32, i32
  }
}

</mosaic_0001>

<bundles_post_ra>
// kernel: sent_encoder_forward.1
= control target key start
LH: loop header
LB: loop body
LE: loop exit
PB: predicated region body
PF: predicated region fallthrough
CT: control target
= control target key end

     0   :  { %10 = vsyncpa [#allocation5], 0  ;;  %s2431_s0 = inlined_call_operand.vmem [shape: bf16[32,8,32], index: 0, kind: input, shape index: {}]   ;;  %s2432_s1 = inlined_call_operand.vmem [shape: bf16[96,32], index: 1, kind: input, shape index: {}]   ;;  %s2433_s2 = inlined_call_operand.vmem [shape: f32[1,32], index: 2, kind: input, shape index: {}]   ;;  %s2434_s3 = inlined_call_operand.vmem [shape: bf16[96,32], index: 3, kind: input, shape index: {}]   ;;  %s2435_s4 = inlined_call_operand.vmem [shape: f32[1,32], index: 4, kind: input, shape index: {}]   ;;  %s2436_s5 = inlined_call_operand.hbm [shape: f32[32,64], index: 5, kind: output, shape index: {}]  }
   0x1   :  { %12 = vsyncpa [#allocation5 + $0x1], 0  ;;  %s1900_s18 = smov 0   ;;  %s1902_s19 = smov 0  }
   0x2   :  { %s1904_s20 = smov 0   ;;  %s1906_s21 = smov 0  }
   0x3 LB: > { %s1454_s22 = sadd.s32 4294967295, %s1863_s21   ;;  %s1455_s23 = sadd.s32 4294967294, %s1863_s21   ;;  %s1863_s21 = sphi %s1906_s21, %s2442_s21   ;;  %s1859_s20 = sphi %s1904_s20, %s2441_s20   ;;  %s1855_s19 = sphi %s1902_s19, %s2440_s19   ;;  %s1851_s18 = sphi %s1900_s18, %s2439_s18  }
   0x4   : > { %s1923_s24 = sadd.s32 1, %s1863_s21   ;;  %s135_s25 = sadd.s32 1, %s1859_s20 }
   0x5   : > { %s132_s26 = ssub.s32 %s1863_s21, %s1923_s24  ;;  %p145_p0 = scmp.ne.s32.totalorder %s1859_s20, %s1855_s19 }
   0x6   : > { %p133_p1 = scmp.eq.s32.totalorder %s132_s26, 0  ;;  %p146_p2 = scmp.eq.s32.totalorder %s1454_s22, 1 }
   0x7   : > { %p151_p3 = scmp.ne.s32.totalorder %s1855_s19, %s1851_s18  ;;  %p152_p4 = scmp.eq.s32.totalorder %s1455_s23, 1 }
   0x8   : > { %s1933_s27 = scalar_select %p133_p1, %s1859_s20, %s135_s25  }
   0x9   : > { %p1935_p5 = por %p146_p2, %p145_p0  ;;  %p1939_p6 = por %p152_p4, %p151_p3 }
   0xa   : > { %p1458_p7 = scmp.ge.s32.totalorder %s1863_s21, 1  ;;  %p191_p8 = scmp.lt.s32.totalorder %s1863_s21, 3 }
   0xc   : > { %p192_p9 = pnand %p1458_p7, %p191_p8 }
   0xd   : > { %s1945_s30 = sshll.u32 (!%p192_p9), %s1454_s22, 4  ;;  %s1866_s11 = smov (!%p192_p9), 32  }
   0xe   : > { %195 = sbr.rel (%p192_p9) target bundleno = 796 (0x31c), region = 40  ;;  %p220_p10 = scmp.lt.s32.totalorder (!%p192_p9), %s1945_s30, 31 }
   0xf   : > { %s1867_s12 = smov (!%p192_p9), 64   ;;  %s216_s23 = sand.u32 (!%p192_p9), 1, %s1855_s19  }
  0x10   : > { %s1459_s25 = sshll.u32 (!%p192_p9), %s216_s23, 4  ;;  %s1389_s17 = scalar_lea.hbm (!%p192_p9), %s2436_s5, %s1945_s30 }
  0x11   : > { %s2278_s26 = scalar_lea.vmem (!%p192_p9), [#allocation4], %s1459_s25  ;;  %s1392_s25 = sshll.u32 (!%p192_p9), %s1389_s17, 4  ;;  %s1393_s25 = int_to_ptr.hbm [resolvable:$true] %s1392_s25 }
  0x12   : > { %s1390_s22 = sshll.u32 (!%p192_p9), %s2278_s26, 4  ;;  %s1391_s22 = int_to_ptr.vmem [resolvable:$true] %s1390_s22 }
  0x13   : > { %vm227_vm0 = vcmask 253952   ;;  %v1865_v0 = vmov 0.0   ;;  %s221_s6 = scalar_select %p220_p10, %s1945_s30, 31  ;;  %vm292_vm1 = vcmask 261120   ;;  %v1536_v49 = vld [vmem:[%s2432_s1 + $0x28] sm:$0xff]  ;;  %v1535_v55 = vld [vmem:[%s2432_s1 + $0x20] sm:$0xff] }
  0x14   : > { %252 = vst.msk [vmem:[#allocation2 + $0x89] sm:$0x1] %vm227_vm0, %v1865_v0  ;;  %605 = vmatpush.bf16.msra.mxu0 %v1536_v49  ;;  %1583 = vmatpush.bf16.msra.mxu2 %v1536_v49  ;;  %v1534_v61 = vld [vmem:[%s2432_s1 + $0x18] sm:$0xff]  ;;  %vm501_vm2 = vcmask 523264   ;;  %vm578_vm3 = vcmask 785408   ;;  %vm1201_vm4 = vcmask 1041409  }
  0x15   : > { %253 = vst.msk [vmem:[#allocation2 + $0x99] sm:$0x1] %vm227_vm0, %v1865_v0  ;;  %s1461_s7 = sshll.u32 %s221_s6, 2  ;;  %vm1203_vm5 = vcmask 1042434   ;;  %vm1205_vm6 = vcmask 1043459   ;;  %vm1207_vm7 = vcmask 1044484  }
  0x16   : > { %228 = vst.msk [vmem:[#allocation2] sm:$0x1] %vm227_vm0, %v1865_v0  ;;  %s1962_s10 = scalar_lea.vmem %s2431_s0, %s1461_s7  ;;  %vm1209_vm8 = vcmask 1045509   ;;  %vm1211_vm9 = vcmask 1046534   ;;  %vm1213_vm10 = vcmask 1047559   ;;  %vm1374_vm11 = vcmask 523520  }
  0x17   : > { %229 = vst.msk [vmem:[#allocation2 + $0x10] sm:$0x1] %vm227_vm0, %v1865_v0  ;;  %v1579_v1 = vld [vmem:[%s1962_s10 + $0x20] sm:$0xff]   ;;  %v1576_v19 = vld [vmem:[%s1962_s10 + $0x8] sm:$0xff]   ;;  %v1577_v23 = vld [vmem:[%s1962_s10 + $0x10] sm:$0xff]   ;;  %s1378_s6 = scalar_lea.sflag [#allocation5], %s216_s23 }
  0x18   : > { %230 = vst.msk [vmem:[#allocation2 + $0x20] sm:$0x1] %vm227_vm0, %v1865_v0  ;;  %v1545_v2 = vld [vmem:[%s1962_s10] sm:$0xff]   ;;  %v1562_v3 = vunpack.c.l.bf16 %v1579_v1  ;;  %v1563_v4 = vunpack.c.h.bf16 %v1579_v1  ;;  %v1580_v20 = vld [vmem:[%s1962_s10 + $0x28] sm:$0xff]   ;;  %v1550_v21 = vunpack.c.l.bf16 %v1576_v19  ;;  %v1551_v22 = vunpack.c.h.bf16 %v1576_v19  ;;  %v1581_v26 = vld [vmem:[%s1962_s10 + $0x30] sm:$0xff]   ;;  %606 = vmatpush.bf16.msra.mxu0 %v1535_v55  ;;  %1584 = vmatpush.bf16.msra.mxu2 %v1535_v55  ;;  %s1815_s7 = sshra.s32 %s1393_s25, 4  ;;  %s1816_s7 = int_to_ptr.hbm [resolvable:$true] %s1815_s7 }
  0x19   : > { %231 = vst.msk [vmem:[#allocation2 + $0x30] sm:$0x1] %vm227_vm0, %v1865_v0  ;;  %v1546_v5 = vunpack.c.l.bf16 %v1545_v2  ;;  %v1547_v6 = vunpack.c.h.bf16 %v1545_v2  ;;  %v1566_v24 = vunpack.c.l.bf16 %v1580_v20  ;;  %v1567_v25 = vunpack.c.h.bf16 %v1580_v20  ;;  %v1582_v29 = vld [vmem:[%s1962_s10 + $0x38] sm:$0xff]   ;;  %s1817_s8 = scalar_lea.hbm %s1816_s7, 16  ;;  %p1822_p0 = scmp.lt.s32.totalorder %s1816_s7, %s2436_s5 }
  0x1a   : > { %232 = vst.msk [vmem:[#allocation2 + $0x40] sm:$0x1] %vm227_vm0, %v1865_v0  ;;  %v1554_v27 = vunpack.c.l.bf16 %v1577_v23  ;;  %v1555_v28 = vunpack.c.h.bf16 %v1577_v23  ;;  %v1570_v30 = vunpack.c.l.bf16 %v1581_v26  ;;  %v1571_v31 = vunpack.c.h.bf16 %v1581_v26  ;;  %v1578_v32 = vld [vmem:[%s1962_s10 + $0x18] sm:$0xff]   ;;  %p1818_p11 = scmp.ne.s32.totalorder %s1816_s7, %s1817_s8  ;;  %s1821_s10 = scalar_lea.hbm %s2436_s5, 32 }
  0x1b   : > { %233 = vst.msk [vmem:[#allocation2 + $0x50] sm:$0x1] %vm227_vm0, %v1865_v0  ;;  %v1574_v33 = vunpack.c.l.bf16 %v1582_v29  ;;  %v1575_v34 = vunpack.c.h.bf16 %v1582_v29  ;;  %v1558_v35 = vunpack.c.l.bf16 %v1578_v32  ;;  %v1559_v38 = vunpack.c.h.bf16 %v1578_v32  ;;  %p1823_p1 = scmp.lt.s32.totalorder %s1821_s10, %s1817_s8 }
  0x1c   : > { %234 = vst.msk [vmem:[#allocation2 + $0x60] sm:$0x1] %vm227_vm0, %v1865_v0  ;;  %607 = vmatpush.bf16.msra.mxu0 %v1534_v61  ;;  %1585 = vmatpush.bf16.msra.mxu2 %v1534_v61  ;;  %p1819_p12 = pnand %p1818_p11, %p1935_p5 }
  0x1d   : > { %301 = vst.msk [vmem:[#allocation2 + $0x81] sm:$0xff] %vm292_vm1, %v1562_v3  ;;  %p1824_p2 = por %p1823_p1, %p1822_p0 }
  0x1e   : > { %302 = vst.msk [vmem:[#allocation2 + $0x91] sm:$0xff] %vm292_vm1, %v1563_v4  ;;  %p1820_p13 = pneg %p1819_p12 }
  0x1f   : > { %293 = vst.msk [vmem:[#allocation2 + $0x1] sm:$0xff] %vm292_vm1, %v1546_v5 }
  0x20   : > { %294 = vst.msk [vmem:[#allocation2 + $0x11] sm:$0xff] %vm292_vm1, %v1547_v6  ;;  %p1825_p3 = pnand %p1824_p2, %p1820_p13 }
  0x21   : > { %235 = vst.msk [vmem:[#allocation2 + $0x70] sm:$0x1] %vm227_vm0, %v1865_v0 }
  0x22   : > { %236 = vst.msk [vmem:[#allocation2 + $0x80] sm:$0x1] %vm227_vm0, %v1865_v0 }
  0x23   : > { %237 = vst.msk [vmem:[#allocation2 + $0x90] sm:$0x1] %vm227_vm0, %v1865_v0 }
  0x24   : > { %v333_v7 = vld [vmem:[#allocation2 + $0x81] sm:$0xff]  ;;  %238 = vst.msk [vmem:[#allocation2 + $0xa0] sm:$0x1] %vm227_vm0, %v1865_v0 }
  0x25   : > { %v334_v8 = vld [vmem:[#allocation2 + $0x91] sm:$0xff]  ;;  %239 = vst.msk [vmem:[#allocation2 + $0xb0] sm:$0x1] %vm227_vm0, %v1865_v0  ;;  %v349_v13 = vld [vmem:[#allocation2 + $0x82] sm:$0xff] }
  0x26   : > { %v1639_v9 = vpack.i.bf16 %v334_v8, %v333_v7  ;;  %v325_v10 = vld [vmem:[#allocation2 + $0x1] sm:$0xff]  ;;  %240 = vst.msk [vmem:[#allocation2 + $0xc0] sm:$0x1] %vm227_vm0, %v1865_v0  ;;  %v350_v14 = vld [vmem:[#allocation2 + $0x92] sm:$0xff] }
  0x27   : > { %v326_v11 = vld [vmem:[#allocation2 + $0x11] sm:$0xff]  ;;  %241 = vst.msk [vmem:[#allocation2 + $0xd0] sm:$0x1] %vm227_vm0, %v1865_v0  ;;  %v1644_v15 = vpack.i.bf16 %v350_v14, %v349_v13  ;;  %v1532_v13 = vld [vmem:[%s2432_s1 + $0x8] sm:$0xff]  ;;  %v309_v29 = vld [vmem:[#allocation2] sm:$0xff] }
  0x28   : > { %1640 = vrot.lane.b32.xlu0 %v1639_v9, %s1866_s11  ;;  %v1649_v12 = vpack.i.bf16 %v326_v11, %v325_v10  ;;  %242 = vst.msk [vmem:[#allocation2 + $0xe0] sm:$0x1] %vm227_vm0, %v1865_v0  ;;  %v1533_v11 = vld [vmem:[%s2432_s1 + $0x10] sm:$0xff] }
  0x29   : > { %243 = vst.msk [vmem:[#allocation2 + $0xf0] sm:$0x1] %vm227_vm0, %v1865_v0  ;;  %608 = vmatpush.bf16.msra.mxu0 %v1533_v11  ;;  %1586 = vmatpush.bf16.msra.mxu2 %v1533_v11  ;;  %v317_v19 = vld [vmem:[#allocation2 + $0x80] sm:$0xff] }
  0x2a   : > { %1650 = vrot.lane.b32.xlu1 %v1649_v12, %s1866_s11  ;;  %244 = vst.msk [vmem:[#allocation2 + $0x9] sm:$0x1] %vm227_vm0, %v1865_v0 }
  0x2b   : > { %245 = vst.msk [vmem:[#allocation2 + $0x19] sm:$0x1] %vm227_vm0, %v1865_v0 }
  0x2c   : > { %246 = vst.msk [vmem:[#allocation2 + $0x29] sm:$0x1] %vm227_vm0, %v1865_v0 }
  0x2d   : > { %247 = vst.msk [vmem:[#allocation2 + $0x39] sm:$0x1] %vm227_vm0, %v1865_v0  ;;  %609 = vmatpush.bf16.msra.mxu0 %v1532_v13  ;;  %1587 = vmatpush.bf16.msra.mxu2 %v1532_v13 }
  0x2e   : > { %248 = vst.msk [vmem:[#allocation2 + $0x49] sm:$0x1] %vm227_vm0, %v1865_v0 }
  0x2f   : > { %249 = vst.msk [vmem:[#allocation2 + $0x59] sm:$0x1] %vm227_vm0, %v1865_v0 }
  0x30   : > { %1645 = vrot.lane.b32.xlu0 %v1644_v15, %s1867_s12  ;;  %250 = vst.msk [vmem:[#allocation2 + $0x69] sm:$0x1] %vm227_vm0, %v1865_v0 }
  0x31   : > { %251 = vst.msk [vmem:[#allocation2 + $0x79] sm:$0x1] %vm227_vm0, %v1865_v0  ;;  %v341_v16 = vld [vmem:[#allocation2 + $0x2] sm:$0xff] }
  0x32   : > { %254 = vst.msk [vmem:[#allocation2 + $0xa9] sm:$0x1] %vm227_vm0, %v1865_v0  ;;  %v342_v17 = vld [vmem:[#allocation2 + $0x12] sm:$0xff] }
  0x33   : > { %255 = vst.msk [vmem:[#allocation2 + $0xb9] sm:$0x1] %vm227_vm0, %v1865_v0  ;;  %v1654_v18 = vpack.i.bf16 %v342_v17, %v341_v16 }
  0x34   : > { %256 = vst.msk [vmem:[#allocation2 + $0xc9] sm:$0x1] %vm227_vm0, %v1865_v0 }
  0x35   : > { %257 = vst.msk [vmem:[#allocation2 + $0xd9] sm:$0x1] %vm227_vm0, %v1865_v0  ;;  %1655 = vrot.lane.b32.xlu1 %v1654_v18, %s1867_s12  ;;  %v318_v18 = vld [vmem:[#allocation2 + $0x90] sm:$0xff] }
  0x36   : > { %258 = vst.msk [vmem:[#allocation2 + $0xe9] sm:$0x1] %vm227_vm0, %v1865_v0 }
  0x37   : > { %259 = vst.msk [vmem:[#allocation2 + $0xf9] sm:$0x1] %vm227_vm0, %v1865_v0 }
  0x38   : > { %668 = vst.msk [vmem:[#allocation3] sm:$0x1] %vm227_vm0, %v1865_v0 }
  0x39   : > { %669 = vst.msk [vmem:[#allocation3 + $0x10] sm:$0x1] %vm227_vm0, %v1865_v0 }
  0x3a   : > { %670 = vst.msk [vmem:[#allocation3 + $0x20] sm:$0x1] %vm227_vm0, %v1865_v0 }
  0x3b   : > { %671 = vst.msk [vmem:[#allocation3 + $0x30] sm:$0x1] %vm227_vm0, %v1865_v0 }
  0x3c   : > { %672 = vst.msk [vmem:[#allocation3 + $0x40] sm:$0x1] %vm227_vm0, %v1865_v0 }
  0x3d   : > { %673 = vst.msk [vmem:[#allocation3 + $0x50] sm:$0x1] %vm227_vm0, %v1865_v0 }
  0x3e   : > { %674 = vst.msk [vmem:[#allocation3 + $0x60] sm:$0x1] %vm227_vm0, %v1865_v0 }
  0x3f   : > { %675 = vst.msk [vmem:[#allocation3 + $0x70] sm:$0x1] %vm227_vm0, %v1865_v0 }
  0x40   : > { %676 = vst.msk [vmem:[#allocation3 + $0x80] sm:$0x1] %vm227_vm0, %v1865_v0 }
  0x41   : > { %677 = vst.msk [vmem:[#allocation3 + $0x90] sm:$0x1] %vm227_vm0, %v1865_v0 }
  0x42   : > { %678 = vst.msk [vmem:[#allocation3 + $0xa0] sm:$0x1] %vm227_vm0, %v1865_v0 }
  0x43   : > { %679 = vst.msk [vmem:[#allocation3 + $0xb0] sm:$0x1] %vm227_vm0, %v1865_v0 }
  0x44   : > { %680 = vst.msk [vmem:[#allocation3 + $0xc0] sm:$0x1] %vm227_vm0, %v1865_v0 }
  0x45   : > { %681 = vst.msk [vmem:[#allocation3 + $0xd0] sm:$0x1] %vm227_vm0, %v1865_v0 }
  0x46   : > { %682 = vst.msk [vmem:[#allocation3 + $0xe0] sm:$0x1] %vm227_vm0, %v1865_v0 }
  0x47   : > { %683 = vst.msk [vmem:[#allocation3 + $0xf0] sm:$0x1] %vm227_vm0, %v1865_v0 }
  0x48   : > { %684 = vst.msk [vmem:[#allocation3 + $0x9] sm:$0x1] %vm227_vm0, %v1865_v0 }
  0x49   : > { %685 = vst.msk [vmem:[#allocation3 + $0x19] sm:$0x1] %vm227_vm0, %v1865_v0 }
  0x4a   : > { %686 = vst.msk [vmem:[#allocation3 + $0x29] sm:$0x1] %vm227_vm0, %v1865_v0 }
  0x4b   : > { %687 = vst.msk [vmem:[#allocation3 + $0x39] sm:$0x1] %vm227_vm0, %v1865_v0 }
  0x4c   : > { %688 = vst.msk [vmem:[#allocation3 + $0x49] sm:$0x1] %vm227_vm0, %v1865_v0 }
  0x4d   : > { %689 = vst.msk [vmem:[#allocation3 + $0x59] sm:$0x1] %vm227_vm0, %v1865_v0 }
  0x4e   : > { %690 = vst.msk [vmem:[#allocation3 + $0x69] sm:$0x1] %vm227_vm0, %v1865_v0 }
  0x4f   : > { %691 = vst.msk [vmem:[#allocation3 + $0x79] sm:$0x1] %vm227_vm0, %v1865_v0 }
  0x50   : > { %692 = vst.msk [vmem:[#allocation3 + $0x89] sm:$0x1] %vm227_vm0, %v1865_v0 }
  0x51   : > { %693 = vst.msk [vmem:[#allocation3 + $0x99] sm:$0x1] %vm227_vm0, %v1865_v0 }
  0x52   : > { %694 = vst.msk [vmem:[#allocation3 + $0xa9] sm:$0x1] %vm227_vm0, %v1865_v0 }
  0x53   : > { %695 = vst.msk [vmem:[#allocation3 + $0xb9] sm:$0x1] %vm227_vm0, %v1865_v0 }
  0x54   : > { %696 = vst.msk [vmem:[#allocation3 + $0xc9] sm:$0x1] %vm227_vm0, %v1865_v0 }
  0x55   : > { %697 = vst.msk [vmem:[#allocation3 + $0xd9] sm:$0x1] %vm227_vm0, %v1865_v0 }
  0x56   : > { %698 = vst.msk [vmem:[#allocation3 + $0xe9] sm:$0x1] %vm227_vm0, %v1865_v0 }
  0x57   : > { %699 = vst.msk [vmem:[#allocation3 + $0xf9] sm:$0x1] %vm227_vm0, %v1865_v0 }
  0x58   : > { %295 = vst.msk [vmem:[#allocation2 + $0x21] sm:$0xff] %vm292_vm1, %v1550_v21  ;;  %v1531_v21 = vld [vmem:[%s2432_s1] sm:$0xff] }
  0x59   : > { %296 = vst.msk [vmem:[#allocation2 + $0x31] sm:$0xff] %vm292_vm1, %v1551_v22  ;;  %610 = vmatpush.bf16.msra.mxu0 %v1531_v21  ;;  %1588 = vmatpush.bf16.msra.mxu2 %v1531_v21 }
  0x5a   : > { %303 = vst.msk [vmem:[#allocation2 + $0xa1] sm:$0xff] %vm292_vm1, %v1566_v24 }
  0x5b   : > { %304 = vst.msk [vmem:[#allocation2 + $0xb1] sm:$0xff] %vm292_vm1, %v1567_v25 }
  0x5c   : > { %297 = vst.msk [vmem:[#allocation2 + $0x41] sm:$0xff] %vm292_vm1, %v1554_v27 }
  0x5d   : > { %298 = vst.msk [vmem:[#allocation2 + $0x51] sm:$0xff] %vm292_vm1, %v1555_v28  ;;  %v310_v28 = vld [vmem:[#allocation2 + $0x10] sm:$0xff] }
  0x5e   : > { %305 = vst.msk [vmem:[#allocation2 + $0xc1] sm:$0xff] %vm292_vm1, %v1570_v30 }
  0x5f   : > { %v327_v36 = vld [vmem:[#allocation2 + $0x21] sm:$0xff]  ;;  %306 = vst.msk [vmem:[#allocation2 + $0xd1] sm:$0xff] %vm292_vm1, %v1571_v31 }
  0x60   : > { %v343_v37 = vld [vmem:[#allocation2 + $0x22] sm:$0xff]  ;;  %v328_v39 = vld [vmem:[#allocation2 + $0x31] sm:$0xff]  ;;  %307 = vst.msk [vmem:[#allocation2 + $0xe1] sm:$0xff] %vm292_vm1, %v1574_v33 }
  0x61   : > { %v344_v40 = vld [vmem:[#allocation2 + $0x32] sm:$0xff]  ;;  %v1669_v41 = vpack.i.bf16 %v328_v39, %v327_v36  ;;  %v335_v43 = vld [vmem:[#allocation2 + $0xa1] sm:$0xff]  ;;  %308 = vst.msk [vmem:[#allocation2 + $0xf1] sm:$0xff] %vm292_vm1, %v1575_v34 }
  0x62   : > { %v1674_v42 = vpack.i.bf16 %v344_v40, %v343_v37  ;;  %v336_v44 = vld [vmem:[#allocation2 + $0xb1] sm:$0xff]  ;;  %299 = vst.msk [vmem:[#allocation2 + $0x61] sm:$0xff] %vm292_vm1, %v1558_v35  ;;  %v351_v51 = vld [vmem:[#allocation2 + $0xa2] sm:$0xff] }
  0x63   : > { %1670 = vrot.lane.b32.xlu0 %v1669_v41, %s1866_s11  ;;  %v1659_v45 = vpack.i.bf16 %v336_v44, %v335_v43  ;;  %300 = vst.msk [vmem:[#allocation2 + $0x71] sm:$0xff] %vm292_vm1, %v1559_v38  ;;  %v329_v46 = vld [vmem:[#allocation2 + $0x41] sm:$0xff]  ;;  %v352_v52 = vld [vmem:[#allocation2 + $0xb2] sm:$0xff] }
  0x64   : > { %1675 = vrot.lane.b32.xlu1 %v1674_v42, %s1867_s12  ;;  %v330_v47 = vld [vmem:[#allocation2 + $0x51] sm:$0xff]  ;;  %v1664_v56 = vpack.i.bf16 %v352_v52, %v351_v51  ;;  %v345_v5 = vld [vmem:[#allocation2 + $0x42] sm:$0xff] }
  0x65   : > { %1660 = vrot.lane.b32.xlu2 %v1659_v45, %s1866_s11  ;;  %v353_v48 = vld [vmem:[#allocation2 + $0xc2] sm:$0xff]  ;;  %v1689_v53 = vpack.i.bf16 %v330_v47, %v329_v46  ;;  %v346_v6 = vld [vmem:[#allocation2 + $0x52] sm:$0xff] }
  0x66   : > { %v354_v50 = vld [vmem:[#allocation2 + $0xd2] sm:$0xff]  ;;  %v337_v62 = vld [vmem:[#allocation2 + $0xc1] sm:$0xff]  ;;  %v1694_v8 = vpack.i.bf16 %v346_v6, %v345_v5 }
  0x67   : > { %v1684_v54 = vpack.i.bf16 %v354_v50, %v353_v48  ;;  %v339_v57 = vld [vmem:[#allocation2 + $0xe1] sm:$0xff]  ;;  %v338_v63 = vld [vmem:[#allocation2 + $0xd1] sm:$0xff] }
  0x68   : > { %v355_v58 = vld [vmem:[#allocation2 + $0xe2] sm:$0xff]  ;;  %v340_v59 = vld [vmem:[#allocation2 + $0xf1] sm:$0xff]  ;;  %v1679_v2 = vpack.i.bf16 %v338_v63, %v337_v62 }
  0x69   : > { %v356_v60 = vld [vmem:[#allocation2 + $0xf2] sm:$0xff]  ;;  %v1699_v0 = vpack.i.bf16 %v340_v59, %v339_v57  ;;  %v347_v3 = vld [vmem:[#allocation2 + $0x62] sm:$0xff] }
  0x6a   : > { %v1704_v1 = vpack.i.bf16 %v356_v60, %v355_v58  ;;  %v348_v4 = vld [vmem:[#allocation2 + $0x72] sm:$0xff]  ;;  %v331_v9 = vld [vmem:[#allocation2 + $0x61] sm:$0xff] }
  0x6b   : > { %1685 = vrot.lane.b32.xlu0 %v1684_v54, %s1867_s12  ;;  %v1714_v7 = vpack.i.bf16 %v348_v4, %v347_v3  ;;  %v332_v10 = vld [vmem:[#allocation2 + $0x71] sm:$0xff]  ;;  %v319_v45 = vld [vmem:[#allocation2 + $0xa0] sm:$0xff] }
  0x6c   : > { %1690 = vrot.lane.b32.xlu1 %v1689_v53, %s1866_s11  ;;  %v1709_v12 = vpack.i.bf16 %v332_v10, %v331_v9  ;;  %v320_v44 = vld [vmem:[#allocation2 + $0xb0] sm:$0xff]  ;;  %v311_v57 = vld [vmem:[#allocation2 + $0x20] sm:$0xff] }
  0x6d   : > { %1665 = vrot.lane.b32.xlu2 %v1664_v56, %s1867_s12  ;;  %v312_v55 = vld [vmem:[#allocation2 + $0x30] sm:$0xff]  ;;  %v321_v6 = vld [vmem:[#allocation2 + $0xc0] sm:$0xff] }
  0x73   : > { %1700 = vrot.lane.b32.xlu0 %v1699_v0, %s1866_s11 }
  0x74   : > { %1705 = vrot.lane.b32.xlu1 %v1704_v1, %s1867_s12 }
  0x75   : > { %1680 = vrot.lane.b32.xlu2 %v1679_v2, %s1866_s11 }
  0x7b   : > { %1715 = vrot.lane.b32.xlu0 %v1714_v7, %s1867_s12  ;;  %v322_v7 = vld [vmem:[#allocation2 + $0xd0] sm:$0xff] }
  0x7d   : > { %1695 = vrot.lane.b32.xlu2 %v1694_v8, %s1867_s12 }
  0x85   : > { %1710 = vrot.lane.b32.xlu2 %v1709_v12, %s1866_s11 }
  0x9a   : > { %v1641_v14 = vpop.permute.xlu0 %1640 }
  0x9b   : > { %v1643_v16 = vunpack.i.h.bf16 %v1641_v14  ;;  %v1642_v17 = vunpack.i.l.bf16 %v1641_v14 }
  0x9c   : > { %v1651_v15 = vpop.permute.xlu1 %1650 }
  0x9d   : > { %v1653_v22 = vunpack.i.h.bf16 %v1651_v15  ;;  %v1652_v23 = vunpack.i.l.bf16 %v1651_v15  ;;  %v494_v26 = vsel %vm292_vm1, %v318_v18, %v1643_v16  ;;  %v493_v27 = vsel %vm292_vm1, %v317_v19, %v1642_v17  ;;  %v313_v17 = vld [vmem:[#allocation2 + $0x40] sm:$0xff]  ;;  %v314_v18 = vld [vmem:[#allocation2 + $0x50] sm:$0xff] }
  0x9f   : > { %v486_v33 = vsel %vm292_vm1, %v310_v28, %v1653_v22  ;;  %v485_v34 = vsel %vm292_vm1, %v309_v29, %v1652_v23 }
  0xa2   : > { %v1646_v20 = vpop.permute.xlu0 %1645 }
  0xa3   : > { %v1648_v24 = vunpack.i.h.bf16 %v1646_v20  ;;  %v1647_v25 = vunpack.i.l.bf16 %v1646_v20 }
  0xa5   : > { %v510_v30 = vsel %vm501_vm2, %v493_v27, %v1647_v25  ;;  %v511_v31 = vsel %vm501_vm2, %v494_v26, %v1648_v24 }
  0xa6   : > { %v522_v32 = vpack.c.bf16 %v511_v31, %v510_v30  ;;  %v323_v30 = vld [vmem:[#allocation2 + $0xe0] sm:$0xff]  ;;  %v324_v31 = vld [vmem:[#allocation2 + $0xf0] sm:$0xff] }
  0xa7   : > { %v1656_v35 = vpop.permute.xlu1 %1655 }
  0xa8   : > { %v1658_v36 = vunpack.i.h.bf16 %v1656_v35  ;;  %v1657_v37 = vunpack.i.l.bf16 %v1656_v35  ;;  %1490 = vmatmul.msk.bf16.vlgmr.msra.gmra.mxu2 %vm578_vm3, %v522_v32 }
  0xaa   : > { %v502_v38 = vsel %vm501_vm2, %v485_v34, %v1657_v37  ;;  %v503_v39 = vsel %vm501_vm2, %v486_v33, %v1658_v36 }
  0xab   : > { %v518_v40 = vpack.c.bf16 %v503_v39, %v502_v38 }
  0xad   : > { %1486 = vmatmul.msk.bf16.vlgmr.msra.gmra.mxu0 %vm578_vm3, %v518_v40 }
  0xbf   : > { %v1661_v41 = vpop.permute.xlu2 %1660 }
  0xc0   : > { %v1663_v42 = vunpack.i.h.bf16 %v1661_v41  ;;  %v1662_v43 = vunpack.i.l.bf16 %v1661_v41 }
  0xc2   : > { %v496_v46 = vsel %vm292_vm1, %v320_v44, %v1663_v42  ;;  %v495_v47 = vsel %vm292_vm1, %v319_v45, %v1662_v43  ;;  %v315_v45 = vld [vmem:[#allocation2 + $0x60] sm:$0xff] }
  0xc7   : > { %v1666_v48 = vpop.permute.xlu2 %1665 }
  0xc8   : > { %v1668_v49 = vunpack.i.h.bf16 %v1666_v48  ;;  %v1667_v50 = vunpack.i.l.bf16 %v1666_v48 }
  0xca   : > { %v512_v51 = vsel %vm501_vm2, %v495_v47, %v1667_v50  ;;  %v513_v52 = vsel %vm501_vm2, %v496_v46, %v1668_v49  ;;  %v316_v46 = vld [vmem:[#allocation2 + $0x70] sm:$0xff] }
  0xcb   : > { %v523_v53 = vpack.c.bf16 %v513_v52, %v512_v51 }
  0xcd   : > { %1491 = vmatmul.msk.bf16.gmra.mxu2 %vm578_vm3, %v523_v53 }
  0xcf   : > { %v1681_v54 = vpop.permute.xlu2 %1680 }
  0xd0   : > { %v1683_v3 = vunpack.i.h.bf16 %v1681_v54  ;;  %v1682_v4 = vunpack.i.l.bf16 %v1681_v54 }
  0xd2   : > { %v498_v8 = vsel %vm292_vm1, %v322_v7, %v1683_v3  ;;  %v497_v9 = vsel %vm292_vm1, %v321_v6, %v1682_v4 }
  0xd5   : > { %v1671_v56 = vpop.permute.xlu0 %1670 }
  0xd6   : > { %v1676_v58 = vpop.permute.xlu1 %1675  ;;  %v1673_v59 = vunpack.i.h.bf16 %v1671_v56  ;;  %v1672_v60 = vunpack.i.l.bf16 %v1671_v56 }
  0xd7   : > { %v1678_v61 = vunpack.i.h.bf16 %v1676_v58  ;;  %v1677_v62 = vunpack.i.l.bf16 %v1676_v58  ;;  %v1696_v14 = vpop.permute.xlu2 %1695 }
  0xd8   : > { %v488_v63 = vsel %vm292_vm1, %v312_v55, %v1673_v59  ;;  %v487_v0 = vsel %vm292_vm1, %v311_v57, %v1672_v60  ;;  %v1698_v21 = vunpack.i.h.bf16 %v1696_v14  ;;  %v1697_v22 = vunpack.i.l.bf16 %v1696_v14  ;;  %v2183_v55 = vld [vmem:[%s2433_s2] ss:$0 sm:$0xff] }
  0xd9   : > { %v504_v1 = vsel %vm501_vm2, %v487_v0, %v1677_v62  ;;  %v505_v2 = vsel %vm501_vm2, %v488_v63, %v1678_v61 }
  0xda   : > { %v519_v5 = vpack.c.bf16 %v505_v2, %v504_v1 }
  0xdc   : > { %1487 = vmatmul.msk.bf16.gmra.mxu0 %vm578_vm3, %v519_v5 }
  0xdd   : > { %v1686_v11 = vpop.permute.xlu0 %1685 }
  0xde   : > { %v1691_v10 = vpop.permute.xlu1 %1690  ;;  %v1688_v15 = vunpack.i.h.bf16 %v1686_v11  ;;  %v1687_v16 = vunpack.i.l.bf16 %v1686_v11 }
  0xdf   : > { %v1693_v12 = vunpack.i.h.bf16 %v1691_v10  ;;  %v1692_v13 = vunpack.i.l.bf16 %v1691_v10  ;;  %v1711_v39 = vpop.permute.xlu2 %1710 }
  0xe0   : > { %v514_v19 = vsel %vm501_vm2, %v497_v9, %v1687_v16  ;;  %v515_v20 = vsel %vm501_vm2, %v498_v8, %v1688_v15  ;;  %v1713_v42 = vunpack.i.h.bf16 %v1711_v39  ;;  %v1712_v43 = vunpack.i.l.bf16 %v1711_v39 }
  0xe1   : > { %v524_v23 = vpack.c.bf16 %v515_v20, %v514_v19  ;;  %v490_v24 = vsel %vm292_vm1, %v314_v18, %v1693_v12  ;;  %v489_v25 = vsel %vm292_vm1, %v313_v17, %v1692_v13 }
  0xe2   : > { %v506_v26 = vsel %vm501_vm2, %v489_v25, %v1697_v22  ;;  %v507_v27 = vsel %vm501_vm2, %v490_v24, %v1698_v21  ;;  %v492_v50 = vsel %vm292_vm1, %v316_v46, %v1713_v42  ;;  %v491_v51 = vsel %vm292_vm1, %v315_v45, %v1712_v43 }
  0xe3   : > { %1492 = vmatmul.msk.bf16.gmra.mxu2 %vm578_vm3, %v524_v23  ;;  %v520_v34 = vpack.c.bf16 %v507_v27, %v506_v26 }
  0xe5   : > { %v1701_v28 = vpop.permute.xlu0 %1700 }
  0xe6   : > { %v1706_v29 = vpop.permute.xlu1 %1705  ;;  %v1703_v32 = vunpack.i.h.bf16 %v1701_v28  ;;  %v1702_v33 = vunpack.i.l.bf16 %v1701_v28 }
  0xe7   : > { %v1708_v35 = vunpack.i.h.bf16 %v1706_v29  ;;  %v1707_v36 = vunpack.i.l.bf16 %v1706_v29 }
  0xe8   : > { %v500_v37 = vsel %vm292_vm1, %v324_v31, %v1703_v32  ;;  %v499_v38 = vsel %vm292_vm1, %v323_v30, %v1702_v33 }
  0xe9   : > { %v516_v40 = vsel %vm501_vm2, %v499_v38, %v1707_v36  ;;  %v517_v41 = vsel %vm501_vm2, %v500_v37, %v1708_v35 }
  0xea   : > { %v525_v47 = vpack.c.bf16 %v517_v41, %v516_v40 }
  0xec   : > { %1488 = vmatmul.msk.bf16.gmra.mxu0 %vm578_vm3, %v520_v34 }
  0xed   : > { %v1716_v44 = vpop.permute.xlu0 %1715 }
  0xee   : > { %v1718_v48 = vunpack.i.h.bf16 %v1716_v44  ;;  %v1717_v49 = vunpack.i.l.bf16 %v1716_v44 }
  0xf0   : > { %v508_v52 = vsel %vm501_vm2, %v491_v51, %v1717_v49  ;;  %v509_v53 = vsel %vm501_vm2, %v492_v50, %v1718_v48 }
  0xf1   : > { %v521_v54 = vpack.c.bf16 %v509_v53, %v508_v52 }
  0xf3   : > { %1493 = vmatmul.msk.bf16.gmra.mxu2 %vm578_vm3, %v525_v47 }
  0xfc   : > { %1489 = vmatmul.msk.bf16.gmra.mxu0 %vm578_vm3, %v521_v54 }
 0x12a   : > { %v612_v56 = vpop.f32.mrf.mxu0 }
 0x12b   : > { %v613_v57 = vadd.f32 %v2183_v55, %v612_v56  ;;  %v632_v58 = vpop.f32.mrf.mxu2 }
 0x12c   : > { %v633_v59 = vadd.f32 %v2183_v55, %v632_v58 }
 0x12d   : > { %v652_v60 = vmax.f32 %v613_v57, 0.0 }
 0x12e   : > { %v660_v61 = vmax.f32 %v633_v59, 0.0 }
 0x12f   : > { %700 = vst.msk [vmem:[#allocation3 + $0x1] sm:$0xff] %vm292_vm1, %v652_v60  ;;  %v1073_v62 = vsel %vm292_vm1, %v652_v60, -inf }
 0x130   : > { %v1074_v63 = vrot.slane %v1073_v62, 4  ;;  %708 = vst.msk [vmem:[#allocation3 + $0x81] sm:$0xff] %vm292_vm1, %v660_v61  ;;  %v1129_v0 = vsel %vm292_vm1, %v660_v61, -inf }
 0x131   : > { %v1130_v1 = vrot.slane %v1129_v0, 4 }
 0x132   : > { %v1075_v2 = vmax.f32 %v1073_v62, %v1074_v63  ;;  %v614_v3 = vpop.f32.mrf.mxu0 }
 0x133   : > { %v1131_v4 = vmax.f32 %v1129_v0, %v1130_v1  ;;  %v615_v5 = vadd.f32 %v2183_v55, %v614_v3  ;;  %v634_v6 = vpop.f32.mrf.mxu2 }
 0x134   : > { %v635_v7 = vadd.f32 %v2183_v55, %v634_v6  ;;  %v1076_v9 = vrot.slane %v1075_v2, 2 }
 0x135   : > { %v653_v8 = vmax.f32 %v615_v5, 0.0  ;;  %v1132_v11 = vrot.slane %v1131_v4, 2 }
 0x136   : > { %v661_v10 = vmax.f32 %v635_v7, 0.0  ;;  %v1077_v16 = vmax.f32 %v1075_v2, %v1076_v9  ;;  %v732_v22 = vld [vmem:[#allocation3 + $0x1] sm:$0xff] }
 0x137   : > { %701 = vst.msk [vmem:[#allocation3 + $0x11] sm:$0xff] %vm292_vm1, %v653_v8  ;;  %v1080_v12 = vsel %vm292_vm1, %v653_v8, -inf  ;;  %v1133_v18 = vmax.f32 %v1131_v4, %v1132_v11  ;;  %v756_v33 = vld [vmem:[#allocation3 + $0x82] sm:$0xff] }
 0x138   : > { %v1081_v13 = vrot.slane %v1080_v12, 4  ;;  %709 = vst.msk [vmem:[#allocation3 + $0x91] sm:$0xff] %vm292_vm1, %v661_v10  ;;  %v1136_v14 = vsel %vm292_vm1, %v661_v10, -inf  ;;  %v1078_v23 = vrot.slane %v1077_v16, 1  ;;  %v740_v37 = vld [vmem:[#allocation3 + $0x81] sm:$0xff] }
 0x139   : > { %v1137_v15 = vrot.slane %v1136_v14, 4  ;;  %v1134_v26 = vrot.slane %v1133_v18, 1  ;;  %v748_v43 = vld [vmem:[#allocation3 + $0x2] sm:$0xff] }
 0x13a   : > { %v1082_v17 = vmax.f32 %v1080_v12, %v1081_v13  ;;  %v1079_v31 = vmax.f32 %v1077_v16, %v1078_v23 }
 0x13b   : > { %v1138_v19 = vmax.f32 %v1136_v14, %v1137_v15  ;;  %v1135_v34 = vmax.f32 %v1133_v18, %v1134_v26 }
 0x13c   : > { %v1083_v20 = vrot.slane %v1082_v17, 2 }
 0x13d   : > { %v1139_v21 = vrot.slane %v1138_v19, 2 }
 0x13e   : > { %v1084_v24 = vmax.f32 %v1082_v17, %v1083_v20  ;;  %v733_v25 = vld [vmem:[#allocation3 + $0x11] sm:$0xff] }
 0x13f   : > { %v1140_v27 = vmax.f32 %v1138_v19, %v1139_v21  ;;  %v1729_v28 = vpack.i.bf16 %v733_v25, %v732_v22  ;;  %v757_v36 = vld [vmem:[#allocation3 + $0x92] sm:$0xff] }
 0x140   : > { %v1085_v29 = vrot.slane %v1084_v24, 1  ;;  %v741_v38 = vld [vmem:[#allocation3 + $0x91] sm:$0xff]  ;;  %v1724_v40 = vpack.i.bf16 %v757_v36, %v756_v33 }
 0x141   : > { %v1141_v30 = vrot.slane %v1140_v27, 1  ;;  %1730 = vrot.lane.b32.xlu0 %v1729_v28, %s1866_s11  ;;  %v1719_v41 = vpack.i.bf16 %v741_v38, %v740_v37  ;;  %v749_v44 = vld [vmem:[#allocation3 + $0x12] sm:$0xff] }
 0x142   : > { %v1086_v32 = vmax.f32 %v1084_v24, %v1085_v29  ;;  %1725 = vrot.lane.b32.xlu2 %v1724_v40, %s1867_s12  ;;  %v1734_v45 = vpack.i.bf16 %v749_v44, %v748_v43 }
 0x143   : > { %v1142_v35 = vmax.f32 %v1140_v27, %v1141_v30  ;;  %1720 = vrot.lane.b32.xlu1 %v1719_v41, %s1866_s11 }
 0x144   : > { %v2199_v39 = vsel %vm1201_vm4, %v1086_v32, %v1079_v31 }
 0x145   : > { %v2202_v42 = vsel %vm1201_vm4, %v1142_v35, %v1135_v34 }
 0x14b   : > { %1735 = vrot.lane.b32.xlu1 %v1734_v45, %s1867_s12 }
 0x150   : > { %v637_v46 = vpop.f32.mrf.mxu2 }
 0x151   : > { %v638_v47 = vadd.f32 %v2183_v55, %v637_v46 }
 0x153   : > { %v662_v48 = vmax.f32 %v638_v47, 0.0 }
 0x155   : > { %710 = vst.msk [vmem:[#allocation3 + $0xa1] sm:$0xff] %vm292_vm1, %v662_v48  ;;  %v1143_v3 = vsel %vm292_vm1, %v662_v48, -inf }
 0x156   : > { %v1144_v9 = vrot.slane %v1143_v3, 4 }
 0x158   : > { %v639_v49 = vpop.f32.mrf.mxu2  ;;  %v1145_v19 = vmax.f32 %v1143_v3, %v1144_v9 }
 0x159   : > { %v617_v50 = vpop.f32.mrf.mxu0  ;;  %v640_v51 = vadd.f32 %v2183_v55, %v639_v49 }
 0x15a   : > { %v618_v52 = vadd.f32 %v2183_v55, %v617_v50  ;;  %v1146_v29 = vrot.slane %v1145_v19, 2 }
 0x15b   : > { %v663_v53 = vmax.f32 %v640_v51, 0.0 }
 0x15c   : > { %v654_v54 = vmax.f32 %v618_v52, 0.0  ;;  %v742_v58 = vld [vmem:[#allocation3 + $0xa1] sm:$0xff]  ;;  %v1147_v41 = vmax.f32 %v1145_v19, %v1146_v29 }
 0x15d   : > { %711 = vst.msk [vmem:[#allocation3 + $0xb1] sm:$0xff] %vm292_vm1, %v663_v53  ;;  %v758_v61 = vld [vmem:[#allocation3 + $0xa2] sm:$0xff]  ;;  %v1150_v13 = vsel %vm292_vm1, %v663_v53, -inf }
 0x15e   : > { %702 = vst.msk [vmem:[#allocation3 + $0x21] sm:$0xff] %vm292_vm1, %v654_v54  ;;  %v1087_v18 = vsel %vm292_vm1, %v654_v54, -inf  ;;  %v1151_v21 = vrot.slane %v1150_v13, 4 }
 0x15f   : > { %v1088_v26 = vrot.slane %v1087_v18, 4 }
 0x160   : > { %v1152_v31 = vmax.f32 %v1150_v13, %v1151_v21 }
 0x161   : > { %v619_v56 = vpop.f32.mrf.mxu0  ;;  %v1089_v37 = vmax.f32 %v1087_v18, %v1088_v26 }
 0x162   : > { %v620_v57 = vadd.f32 %v2183_v55, %v619_v56  ;;  %v1153_v44 = vrot.slane %v1152_v31, 2 }
 0x163   : > { %v1090_v54 = vrot.slane %v1089_v37, 2 }
 0x164   : > { %v655_v59 = vmax.f32 %v620_v57, 0.0  ;;  %v743_v60 = vld [vmem:[#allocation3 + $0xb1] sm:$0xff] }
 0x165   : > { %v759_v62 = vld [vmem:[#allocation3 + $0xb2] sm:$0xff]  ;;  %v1739_v63 = vpack.i.bf16 %v743_v60, %v742_v58  ;;  %v734_v7 = vld [vmem:[#allocation3 + $0x21] sm:$0xff] }
 0x166   : > { %v1744_v0 = vpack.i.bf16 %v759_v62, %v758_v61  ;;  %703 = vst.msk [vmem:[#allocation3 + $0x31] sm:$0xff] %vm292_vm1, %v655_v59  ;;  %v642_v1 = vpop.f32.mrf.mxu2  ;;  %v750_v8 = vld [vmem:[#allocation3 + $0x22] sm:$0xff]  ;;  %v1094_v20 = vsel %vm292_vm1, %v655_v59, -inf }
 0x167   : > { %v643_v2 = vadd.f32 %v2183_v55, %v642_v1  ;;  %1740 = vrot.lane.b32.xlu2 %v1739_v63, %s1866_s11  ;;  %v1095_v27 = vrot.slane %v1094_v20, 4  ;;  %v1148_v1 = vrot.slane %v1147_v41, 1 }
 0x168   : > { %1745 = vrot.lane.b32.xlu0 %v1744_v0, %s1867_s12 }
 0x169   : > { %v622_v4 = vpop.f32.mrf.mxu0  ;;  %v664_v5 = vmax.f32 %v643_v2, 0.0  ;;  %v1096_v38 = vmax.f32 %v1094_v20, %v1095_v27  ;;  %v1154_v2 = vmax.f32 %v1152_v31, %v1153_v44 }
 0x16a   : > { %v623_v6 = vadd.f32 %v2183_v55, %v622_v4 }
 0x16b   : > { %712 = vst.msk [vmem:[#allocation3 + $0xc1] sm:$0xff] %vm292_vm1, %v664_v5  ;;  %v1157_v24 = vsel %vm292_vm1, %v664_v5, -inf  ;;  %v1097_v56 = vrot.slane %v1096_v38, 2  ;;  %v1155_v26 = vrot.slane %v1154_v2, 1 }
 0x16c   : > { %v656_v10 = vmax.f32 %v623_v6, 0.0  ;;  %v1158_v33 = vrot.slane %v1157_v24, 4 }
 0x16d   : > { %v735_v11 = vld [vmem:[#allocation3 + $0x31] sm:$0xff] }
 0x16e   : > { %v751_v12 = vld [vmem:[#allocation3 + $0x32] sm:$0xff]  ;;  %704 = vst.msk [vmem:[#allocation3 + $0x41] sm:$0xff] %vm292_vm1, %v656_v10  ;;  %v1749_v14 = vpack.i.bf16 %v735_v11, %v734_v7  ;;  %v644_v15 = vpop.f32.mrf.mxu2  ;;  %v1101_v32 = vsel %vm292_vm1, %v656_v10, -inf  ;;  %v1159_v45 = vmax.f32 %v1157_v24, %v1158_v33  ;;  %v1091_v11 = vmax.f32 %v1089_v37, %v1090_v54  ;;  %v1542_v24 = vld [vmem:[%s2434_s3 + $0x28] sm:$0xff]  ;;  %v1541_v33 = vld [vmem:[%s2434_s3 + $0x20] sm:$0xff] }
 0x16f   : > { %v1754_v16 = vpack.i.bf16 %v751_v12, %v750_v8  ;;  %v645_v17 = vadd.f32 %v2183_v55, %v644_v15  ;;  %v1102_v43 = vrot.slane %v1101_v32, 4  ;;  %1589 = vmatpush.bf16.msra.mxu3 %v1542_v24  ;;  %1010 = vmatpush.bf16.msra.mxu1 %v1542_v24 }
 0x170   : > { %1750 = vrot.lane.b32.xlu1 %v1749_v14, %s1866_s11  ;;  %v1160_v3 = vrot.slane %v1159_v45, 2  ;;  %v1098_v14 = vmax.f32 %v1096_v38, %v1097_v56  ;;  %v1092_v29 = vrot.slane %v1091_v11, 1 }
 0x171   : > { %1755 = vrot.lane.b32.xlu2 %v1754_v16, %s1867_s12  ;;  %v624_v22 = vpop.f32.mrf.mxu0  ;;  %v665_v23 = vmax.f32 %v645_v17, 0.0  ;;  %v1103_v61 = vmax.f32 %v1101_v32, %v1102_v43 }
 0x172   : > { %v625_v25 = vadd.f32 %v2183_v55, %v624_v22  ;;  %v760_v51 = vld [vmem:[#allocation3 + $0xc2] sm:$0xff]  ;;  %v1161_v17 = vmax.f32 %v1159_v45, %v1160_v3  ;;  %v1099_v38 = vrot.slane %v1098_v14, 1 }
 0x173   : > { %713 = vst.msk [vmem:[#allocation3 + $0xd1] sm:$0xff] %vm292_vm1, %v665_v23  ;;  %v1164_v28 = vsel %vm292_vm1, %v665_v23, -inf  ;;  %v744_v60 = vld [vmem:[#allocation3 + $0xc1] sm:$0xff]  ;;  %v1104_v15 = vrot.slane %v1103_v61, 2  ;;  %1590 = vmatpush.bf16.msra.mxu3 %v1541_v33  ;;  %1011 = vmatpush.bf16.msra.mxu1 %v1541_v33 }
 0x174   : > { %v657_v30 = vmax.f32 %v625_v25, 0.0  ;;  %v1165_v35 = vrot.slane %v1164_v28, 4  ;;  %v1149_v25 = vmax.f32 %v1147_v41, %v1148_v1 }
 0x175   : > { %v736_v58 = vld [vmem:[#allocation3 + $0x41] sm:$0xff] }
 0x176   : > { %705 = vst.msk [vmem:[#allocation3 + $0x51] sm:$0xff] %vm292_vm1, %v657_v30  ;;  %v1108_v34 = vsel %vm292_vm1, %v657_v30, -inf  ;;  %v647_v36 = vpop.f32.mrf.mxu2  ;;  %v1166_v49 = vmax.f32 %v1164_v28, %v1165_v35  ;;  %v752_v22 = vld [vmem:[#allocation3 + $0x42] sm:$0xff] }
 0x177   : > { %v648_v40 = vadd.f32 %v2183_v55, %v647_v36  ;;  %v1109_v46 = vrot.slane %v1108_v34, 4 }
 0x178   : > { %v1167_v6 = vrot.slane %v1166_v49, 2 }
 0x179   : > { %v627_v47 = vpop.f32.mrf.mxu0  ;;  %v666_v48 = vmax.f32 %v648_v40, 0.0  ;;  %v1110_v4 = vmax.f32 %v1108_v34, %v1109_v46  ;;  %v1105_v34 = vmax.f32 %v1103_v61, %v1104_v15  ;;  %v1216_v46 = vsel %vm1203_vm5, %v1149_v25, %v2202_v42 }
 0x17a   : > { %v628_v50 = vadd.f32 %v2183_v55, %v627_v47  ;;  %v761_v52 = vld [vmem:[#allocation3 + $0xd2] sm:$0xff]  ;;  %v1168_v27 = vmax.f32 %v1166_v49, %v1167_v6  ;;  %v1100_v42 = vmax.f32 %v1098_v14, %v1099_v38  ;;  %v724_v38 = vld [vmem:[#allocation3 + $0x80] sm:$0xff] }
 0x17b   : > { %v745_v53 = vld [vmem:[#allocation3 + $0xd1] sm:$0xff]  ;;  %714 = vst.msk [vmem:[#allocation3 + $0xe1] sm:$0xff] %vm292_vm1, %v666_v48  ;;  %v1171_v57 = vsel %vm292_vm1, %v666_v48, -inf  ;;  %v1764_v59 = vpack.i.bf16 %v761_v52, %v760_v51  ;;  %v1111_v18 = vrot.slane %v1110_v4, 2  ;;  %v1156_v51 = vmax.f32 %v1154_v2, %v1155_v26 }
 0x17c   : > { %v658_v62 = vmax.f32 %v628_v50, 0.0  ;;  %v1172_v63 = vrot.slane %v1171_v57, 4  ;;  %v1759_v0 = vpack.i.bf16 %v745_v53, %v744_v60  ;;  %v1169_v41 = vrot.slane %v1168_v27, 1  ;;  %v1540_v49 = vld [vmem:[%s2434_s3 + $0x18] sm:$0xff] }
 0x17d   : > { %v737_v5 = vld [vmem:[#allocation3 + $0x51] sm:$0xff]  ;;  %1765 = vrot.lane.b32.xlu1 %v1764_v59, %s1867_s12  ;;  %v1112_v40 = vmax.f32 %v1110_v4, %v1111_v18  ;;  %v1093_v50 = vmax.f32 %v1091_v11, %v1092_v29  ;;  %v1106_v52 = vrot.slane %v1105_v34, 1  ;;  %1591 = vmatpush.bf16.msra.mxu3 %v1540_v49 }
 0x17e   : > { %706 = vst.msk [vmem:[#allocation3 + $0x61] sm:$0xff] %vm292_vm1, %v658_v62  ;;  %v1115_v7 = vsel %vm292_vm1, %v658_v62, -inf  ;;  %v1173_v8 = vmax.f32 %v1171_v57, %v1172_v63  ;;  %v1769_v9 = vpack.i.bf16 %v737_v5, %v736_v58  ;;  %1760 = vrot.lane.b32.xlu0 %v1759_v0, %s1866_s11  ;;  %v649_v10 = vpop.f32.mrf.mxu2  ;;  %v753_v23 = vld [vmem:[#allocation3 + $0x52] sm:$0xff]  ;;  %v1170_v59 = vmax.f32 %v1168_v27, %v1169_v41 }
 0x17f   : > { %v1116_v12 = vrot.slane %v1115_v7, 4  ;;  %v650_v13 = vadd.f32 %v2183_v55, %v649_v10  ;;  %v1774_v37 = vpack.i.bf16 %v753_v23, %v752_v22  ;;  %v1113_v56 = vrot.slane %v1112_v40, 1  ;;  %1012 = vmatpush.bf16.msra.mxu1 %v1540_v49  ;;  %v1539_v29 = vld [vmem:[%s2434_s3 + $0x10] sm:$0xff] }
 0x180   : > { %v1174_v16 = vrot.slane %v1173_v8, 2  ;;  %1770 = vrot.lane.b32.xlu2 %v1769_v9, %s1866_s11  ;;  %v1204_v6 = vsel %vm1203_vm5, %v1093_v50, %v2199_v39  ;;  %v717_v50 = vld [vmem:[#allocation3 + $0x10] sm:$0xff] }
 0x181   : > { %v1117_v19 = vmax.f32 %v1115_v7, %v1116_v12  ;;  %v629_v20 = vpop.f32.mrf.mxu0  ;;  %v667_v21 = vmax.f32 %v650_v13, 0.0  ;;  %v1217_v7 = vsel %vm1205_vm6, %v1156_v51, %v1216_v46  ;;  %v1114_v11 = vmax.f32 %v1112_v40, %v1113_v56  ;;  %1592 = vmatpush.bf16.msra.mxu3 %v1539_v29  ;;  %v716_v51 = vld [vmem:[#allocation3] sm:$0xff] }
 0x182   : > { %v630_v28 = vadd.f32 %v2183_v55, %v629_v20  ;;  %v1175_v31 = vmax.f32 %v1173_v8, %v1174_v16  ;;  %v1162_v55 = vrot.slane %v1161_v17, 1  ;;  %v762_v58 = vld [vmem:[#allocation3 + $0xe2] sm:$0xff]  ;;  %v1107_v8 = vmax.f32 %v1105_v34, %v1106_v52 }
 0x183   : > { %v1118_v30 = vrot.slane %v1117_v19, 2  ;;  %715 = vst.msk [vmem:[#allocation3 + $0xf1] sm:$0xff] %vm292_vm1, %v667_v21  ;;  %v1178_v32 = vsel %vm292_vm1, %v667_v21, -inf  ;;  %v746_v63 = vld [vmem:[#allocation3 + $0xe1] sm:$0xff]  ;;  %1013 = vmatpush.bf16.msra.mxu1 %v1539_v29 }
 0x184   : > { %v659_v35 = vmax.f32 %v630_v28, 0.0  ;;  %v1179_v36 = vrot.slane %v1178_v32, 4  ;;  %v1176_v47 = vrot.slane %v1175_v31, 1  ;;  %v1163_v54 = vmax.f32 %v1161_v17, %v1162_v55  ;;  %v725_v55 = vld [vmem:[#allocation3 + $0x90] sm:$0xff] }
 0x185   : > { %v1119_v43 = vmax.f32 %v1117_v19, %v1118_v30  ;;  %v738_v5 = vld [vmem:[#allocation3 + $0x61] sm:$0xff]  ;;  %v1206_v19 = vsel %vm1205_vm6, %v1100_v42, %v1204_v6 }
 0x186   : > { %707 = vst.msk [vmem:[#allocation3 + $0x71] sm:$0xff] %vm292_vm1, %v659_v35  ;;  %v1122_v44 = vsel %vm292_vm1, %v659_v35, -inf  ;;  %v1180_v45 = vmax.f32 %v1178_v32, %v1179_v36  ;;  %1775 = vrot.lane.b32.xlu0 %v1774_v37, %s1867_s12  ;;  %v1177_v1 = vmax.f32 %v1175_v31, %v1176_v47  ;;  %v1218_v10 = vsel %vm1207_vm7, %v1163_v54, %v1217_v7  ;;  %v754_v39 = vld [vmem:[#allocation3 + $0x62] sm:$0xff] }
 0x187   : > { %v1123_v48 = vrot.slane %v1122_v44, 4  ;;  %v1120_v60 = vrot.slane %v1119_v43, 1  ;;  %v1219_v18 = vsel %vm1209_vm8, %v1170_v59, %v1218_v10  ;;  %v1208_v22 = vsel %vm1207_vm7, %v1107_v8, %v1206_v19  ;;  %v1538_v30 = vld [vmem:[%s2434_s3 + $0x8] sm:$0xff]  ;;  %v1537_v31 = vld [vmem:[%s2434_s3] sm:$0xff] }
 0x188   : > { %v1181_v53 = vrot.slane %v1180_v45, 2  ;;  %v1220_v21 = vsel %vm1211_vm9, %v1177_v1, %v1219_v18  ;;  %v1210_v26 = vsel %vm1209_vm8, %v1114_v11, %v1208_v22  ;;  %1593 = vmatpush.bf16.msra.mxu3 %v1538_v30  ;;  %1014 = vmatpush.bf16.msra.mxu1 %v1538_v30 }
 0x189   : > { %v1124_v57 = vmax.f32 %v1122_v44, %v1123_v48  ;;  %v1121_v14 = vmax.f32 %v1119_v43, %v1120_v60 }
 0x18a   : > { %v1182_v61 = vmax.f32 %v1180_v45, %v1181_v53  ;;  %v763_v62 = vld [vmem:[#allocation3 + $0xf2] sm:$0xff] }
 0x18b   : > { %v747_v0 = vld [vmem:[#allocation3 + $0xf1] sm:$0xff]  ;;  %v1125_v3 = vrot.slane %v1124_v57, 2  ;;  %v1784_v4 = vpack.i.bf16 %v763_v62, %v762_v58  ;;  %v1212_v27 = vsel %vm1211_vm9, %v1121_v14, %v1210_v26  ;;  %v718_v14 = vld [vmem:[#allocation3 + $0x20] sm:$0xff] }
 0x18c   : > { %v1779_v2 = vpack.i.bf16 %v747_v0, %v746_v63  ;;  %v1183_v9 = vrot.slane %v1182_v61, 1  ;;  %1594 = vmatpush.bf16.msra.mxu3 %v1537_v31  ;;  %1015 = vmatpush.bf16.msra.mxu1 %v1537_v31  ;;  %v726_v63 = vld [vmem:[#allocation3 + $0xa0] sm:$0xff]  ;;  %v727_v0 = vld [vmem:[#allocation3 + $0xb0] sm:$0xff] }
 0x18d   : > { %v1126_v12 = vmax.f32 %v1124_v57, %v1125_v3  ;;  %1785 = vrot.lane.b32.xlu2 %v1784_v4, %s1867_s12  ;;  %v739_v13 = vld [vmem:[#allocation3 + $0x71] sm:$0xff]  ;;  %v728_v26 = vld [vmem:[#allocation3 + $0xc0] sm:$0xff] }
 0x18e   : > { %1780 = vrot.lane.b32.xlu1 %v1779_v2, %s1866_s11  ;;  %v1184_v15 = vmax.f32 %v1182_v61, %v1183_v9  ;;  %v1789_v16 = vpack.i.bf16 %v739_v13, %v738_v5  ;;  %v755_v17 = vld [vmem:[#allocation3 + $0x72] sm:$0xff] }
 0x18f   : > { %v1127_v20 = vrot.slane %v1126_v12, 1  ;;  %v1794_v25 = vpack.i.bf16 %v755_v17, %v754_v39 }
 0x190   : > { %1790 = vrot.lane.b32.xlu0 %v1789_v16, %s1866_s11  ;;  %v1221_v23 = vsel %vm1213_vm10, %v1184_v15, %v1220_v21  ;;  %v719_v15 = vld [vmem:[#allocation3 + $0x30] sm:$0xff] }
 0x191   : > { %v1128_v24 = vmax.f32 %v1126_v12, %v1127_v20  ;;  %1225 = vst.msk [vmem:[%s2278_s26 + $0x8] sm:$0xff] %vm292_vm1, %v1221_v23 }
 0x193   : > { %v1214_v28 = vsel %vm1213_vm10, %v1128_v24, %v1212_v27  ;;  %v729_v27 = vld [vmem:[#allocation3 + $0xd0] sm:$0xff] }
 0x194   : > { %1224 = vst.msk [vmem:[%s2278_s26] sm:$0xff] %vm292_vm1, %v1214_v28 }
 0x196   : > { %1795 = vrot.lane.b32.xlu1 %v1794_v25, %s1867_s12 }
 0x19c   : > { %v1726_v32 = vpop.permute.xlu2 %1725 }
 0x19d   : > { %v1728_v36 = vunpack.i.h.bf16 %v1726_v32  ;;  %v1727_v37 = vunpack.i.l.bf16 %v1726_v32 }
 0x1b3   : > { %v1731_v40 = vpop.permute.xlu0 %1730 }
 0x1b4   : > { %v1733_v47 = vunpack.i.h.bf16 %v1731_v40  ;;  %v1732_v48 = vunpack.i.l.bf16 %v1731_v40 }
 0x1b5   : > { %v1721_v33 = vpop.permute.xlu1 %1720 }
 0x1b6   : > { %v1723_v34 = vunpack.i.h.bf16 %v1721_v33  ;;  %v1722_v35 = vunpack.i.l.bf16 %v1721_v33  ;;  %v893_v54 = vsel %vm292_vm1, %v717_v50, %v1733_v47  ;;  %v892_v56 = vsel %vm292_vm1, %v716_v51, %v1732_v48 }
 0x1b8   : > { %v901_v41 = vsel %vm292_vm1, %v725_v55, %v1723_v34  ;;  %v900_v43 = vsel %vm292_vm1, %v724_v38, %v1722_v35  ;;  %v721_v38 = vld [vmem:[#allocation3 + $0x50] sm:$0xff] }
 0x1b9   : > { %v916_v44 = vsel %vm501_vm2, %v900_v43, %v1727_v37  ;;  %v917_v45 = vsel %vm501_vm2, %v901_v41, %v1728_v36  ;;  %v720_v37 = vld [vmem:[#allocation3 + $0x40] sm:$0xff] }
 0x1ba   : > { %v928_v46 = vpack.c.bf16 %v917_v45, %v916_v44 }
 0x1bc   : > { %1522 = vmatmul.msk.bf16.vlgmr.msra.gmra.mxu3 %vm578_vm3, %v928_v46 }
 0x1bd   : > { %v1736_v49 = vpop.permute.xlu1 %1735 }
 0x1be   : > { %v1738_v52 = vunpack.i.h.bf16 %v1736_v49  ;;  %v1737_v53 = vunpack.i.l.bf16 %v1736_v49 }
 0x1c0   : > { %v908_v57 = vsel %vm501_vm2, %v892_v56, %v1737_v53  ;;  %v909_v58 = vsel %vm501_vm2, %v893_v54, %v1738_v52  ;;  %v730_v53 = vld [vmem:[#allocation3 + $0xe0] sm:$0xff]  ;;  %v731_v54 = vld [vmem:[#allocation3 + $0xf0] sm:$0xff] }
 0x1c1   : > { %v924_v42 = vpack.c.bf16 %v909_v58, %v908_v57  ;;  %v1741_v59 = vpop.permute.xlu2 %1740 }
 0x1c2   : > { %v1743_v60 = vunpack.i.h.bf16 %v1741_v59  ;;  %v1742_v61 = vunpack.i.l.bf16 %v1741_v59 }
 0x1c3   : > { %1518 = vmatmul.msk.bf16.vlgmr.msra.gmra.mxu1 %vm578_vm3, %v924_v42 }
 0x1c4   : > { %v903_v4 = vsel %vm292_vm1, %v727_v0, %v1743_v60  ;;  %v902_v2 = vsel %vm292_vm1, %v726_v63, %v1742_v61  ;;  %v722_v0 = vld [vmem:[#allocation3 + $0x60] sm:$0xff] }
 0x1cb   : > { %v1756_v8 = vpop.permute.xlu2 %1755 }
 0x1cc   : > { %v1758_v12 = vunpack.i.h.bf16 %v1756_v8  ;;  %v1757_v13 = vunpack.i.l.bf16 %v1756_v8 }
 0x1da   : > { %v1746_v62 = vpop.permute.xlu0 %1745  ;;  %v1771_v28 = vpop.permute.xlu2 %1770 }
 0x1db   : > { %v1748_v1 = vunpack.i.h.bf16 %v1746_v62  ;;  %v1747_v3 = vunpack.i.l.bf16 %v1746_v62  ;;  %v1773_v34 = vunpack.i.h.bf16 %v1771_v28  ;;  %v1772_v35 = vunpack.i.l.bf16 %v1771_v28 }
 0x1dd   : > { %v918_v5 = vsel %vm501_vm2, %v902_v2, %v1747_v3  ;;  %v919_v6 = vsel %vm501_vm2, %v903_v4, %v1748_v1  ;;  %v897_v41 = vsel %vm292_vm1, %v721_v38, %v1773_v34  ;;  %v896_v43 = vsel %vm292_vm1, %v720_v37, %v1772_v35  ;;  %v723_v1 = vld [vmem:[#allocation3 + $0x70] sm:$0xff] }
 0x1de   : > { %v929_v7 = vpack.c.bf16 %v919_v6, %v918_v5 }
 0x1e0   : > { %1523 = vmatmul.msk.bf16.gmra.mxu3 %vm578_vm3, %v929_v7 }
 0x1e2   : > { %v1751_v9 = vpop.permute.xlu1 %1750 }
 0x1e3   : > { %v1753_v10 = vunpack.i.h.bf16 %v1751_v9  ;;  %v1752_v11 = vunpack.i.l.bf16 %v1751_v9 }
 0x1e5   : > { %v895_v16 = vsel %vm292_vm1, %v719_v15, %v1753_v10  ;;  %v894_v39 = vsel %vm292_vm1, %v718_v14, %v1752_v11  ;;  %v2339_v15 = vld [vmem:[%s2435_s4] ss:$0 sm:$0xff] }
 0x1e6   : > { %v910_v17 = vsel %vm501_vm2, %v894_v39, %v1757_v13  ;;  %v911_v18 = vsel %vm501_vm2, %v895_v16, %v1758_v12 }
 0x1e7   : > { %v925_v19 = vpack.c.bf16 %v911_v18, %v910_v17  ;;  %v1786_v47 = vpop.permute.xlu2 %1785 }
 0x1e8   : > { %v1788_v51 = vunpack.i.h.bf16 %v1786_v47  ;;  %v1787_v52 = vunpack.i.l.bf16 %v1786_v47 }
 0x1e9   : > { %1519 = vmatmul.msk.bf16.gmra.mxu1 %vm578_vm3, %v925_v19 }
 0x1ef   : > { %v1766_v20 = vpop.permute.xlu1 %1765 }
 0x1f0   : > { %v1768_v21 = vunpack.i.h.bf16 %v1766_v20  ;;  %v1767_v22 = vunpack.i.l.bf16 %v1766_v20  ;;  %v1761_v23 = vpop.permute.xlu0 %1760 }
 0x1f1   : > { %v1763_v24 = vunpack.i.h.bf16 %v1761_v23  ;;  %v1762_v25 = vunpack.i.l.bf16 %v1761_v23 }
 0x1f3   : > { %v905_v29 = vsel %vm292_vm1, %v729_v27, %v1763_v24  ;;  %v904_v30 = vsel %vm292_vm1, %v728_v26, %v1762_v25 }
 0x1f4   : > { %v920_v31 = vsel %vm501_vm2, %v904_v30, %v1767_v22  ;;  %v921_v32 = vsel %vm501_vm2, %v905_v29, %v1768_v21 }
 0x1f5   : > { %v930_v33 = vpack.c.bf16 %v921_v32, %v920_v31 }
 0x1f7   : > { %1524 = vmatmul.msk.bf16.gmra.mxu3 %vm578_vm3, %v930_v33 }
 0x1f8   : > { %v1776_v36 = vpop.permute.xlu0 %1775 }
 0x1f9   : > { %v1778_v55 = vunpack.i.h.bf16 %v1776_v36  ;;  %v1777_v40 = vunpack.i.l.bf16 %v1776_v36 }
 0x1fb   : > { %v912_v44 = vsel %vm501_vm2, %v896_v43, %v1777_v40  ;;  %v913_v45 = vsel %vm501_vm2, %v897_v41, %v1778_v55 }
 0x1fc   : > { %v926_v46 = vpack.c.bf16 %v913_v45, %v912_v44 }
 0x1fe   : > { %1520 = vmatmul.msk.bf16.gmra.mxu1 %vm578_vm3, %v926_v46 }
 0x200   : > { %v1781_v48 = vpop.permute.xlu1 %1780 }
 0x201   : > { %v1783_v49 = vunpack.i.h.bf16 %v1781_v48  ;;  %v1782_v50 = vunpack.i.l.bf16 %v1781_v48 }
 0x202   : > { %v1791_v58 = vpop.permute.xlu0 %1790 }
 0x203   : > { %v907_v56 = vsel %vm292_vm1, %v731_v54, %v1783_v49  ;;  %v906_v57 = vsel %vm292_vm1, %v730_v53, %v1782_v50  ;;  %v1793_v61 = vunpack.i.h.bf16 %v1791_v58  ;;  %v1792_v62 = vunpack.i.l.bf16 %v1791_v58 }
 0x204   : > { %v922_v42 = vsel %vm501_vm2, %v906_v57, %v1787_v52  ;;  %v923_v59 = vsel %vm501_vm2, %v907_v56, %v1788_v51 }
 0x205   : > { %v931_v60 = vpack.c.bf16 %v923_v59, %v922_v42  ;;  %v899_v2 = vsel %vm292_vm1, %v723_v1, %v1793_v61  ;;  %v898_v5 = vsel %vm292_vm1, %v722_v0, %v1792_v62 }
 0x207   : > { %1525 = vmatmul.msk.bf16.gmra.mxu3 %vm578_vm3, %v931_v60 }
 0x208   : > { %v1796_v63 = vpop.permute.xlu1 %1795 }
 0x209   : > { %v1798_v3 = vunpack.i.h.bf16 %v1796_v63  ;;  %v1797_v4 = vunpack.i.l.bf16 %v1796_v63 }
 0x20b   : > { %v914_v6 = vsel %vm501_vm2, %v898_v5, %v1797_v4  ;;  %v915_v7 = vsel %vm501_vm2, %v899_v2, %v1798_v3 }
 0x20c   : > { %v927_v8 = vpack.c.bf16 %v915_v7, %v914_v6 }
 0x20e   : > { %1521 = vmatmul.msk.bf16.gmra.mxu1 %vm578_vm3, %v927_v8 }
 0x23f   : > { %v1037_v9 = vpop.f32.mrf.mxu3 }
 0x240   : > { %v1017_v10 = vpop.f32.mrf.mxu1  ;;  %v1038_v16 = vadd.f32 %v2339_v15, %v1037_v9 }
 0x241   : > { %v1018_v39 = vadd.f32 %v2339_v15, %v1017_v10 }
 0x242   : > { %v1065_v18 = vmax.f32 %v1038_v16, 0.0 }
 0x243   : > { %v1057_v20 = vmax.f32 %v1018_v39, 0.0 }
 0x244   : > { %v1282_v21 = vsel %vm292_vm1, %v1065_v18, -inf }
 0x245   : > { %v1283_v23 = vrot.slane %v1282_v21, 4  ;;  %v1226_v24 = vsel %vm292_vm1, %v1057_v20, -inf }
 0x246   : > { %v1227_v28 = vrot.slane %v1226_v24, 4 }
 0x247   : > { %v1039_v11 = vpop.f32.mrf.mxu3  ;;  %v1284_v31 = vmax.f32 %v1282_v21, %v1283_v23 }
 0x248   : > { %v1019_v12 = vpop.f32.mrf.mxu1  ;;  %v1040_v22 = vadd.f32 %v2339_v15, %v1039_v11  ;;  %v1228_v38 = vmax.f32 %v1226_v24, %v1227_v28 }
 0x249   : > { %v1020_v25 = vadd.f32 %v2339_v15, %v1019_v12  ;;  %v1285_v41 = vrot.slane %v1284_v31, 2 }
 0x24a   : > { %v1066_v26 = vmax.f32 %v1040_v22, 0.0  ;;  %v1229_v50 = vrot.slane %v1228_v38, 2 }
 0x24b   : > { %v1058_v33 = vmax.f32 %v1020_v25, 0.0  ;;  %v1286_v56 = vmax.f32 %v1284_v31, %v1285_v41 }
 0x24c   : > { %v1289_v35 = vsel %vm292_vm1, %v1066_v26, -inf  ;;  %v1230_v3 = vmax.f32 %v1228_v38, %v1229_v50 }
 0x24d   : > { %v1290_v44 = vrot.slane %v1289_v35, 4  ;;  %v1233_v45 = vsel %vm292_vm1, %v1058_v33, -inf  ;;  %v1287_v6 = vrot.slane %v1286_v56, 1 }
 0x24e   : > { %v1234_v57 = vrot.slane %v1233_v45, 4 }
 0x24f   : > { %v1291_v59 = vmax.f32 %v1289_v35, %v1290_v44  ;;  %v2366_v22 = vmax.f32 %v1286_v56, %v1287_v6 }
 0x250   : > { %v1235_v7 = vmax.f32 %v1233_v45, %v1234_v57 }
 0x251   : > { %v1292_v10 = vrot.slane %v1291_v59, 2 }
 0x252   : > { %v1236_v23 = vrot.slane %v1235_v7, 2 }
 0x253   : > { %v1293_v26 = vmax.f32 %v1291_v59, %v1292_v10 }
 0x254   : > { %v1237_v38 = vmax.f32 %v1235_v7, %v1236_v23 }
 0x263   : > { %v1042_v13 = vpop.f32.mrf.mxu3 }
 0x264   : > { %v1043_v29 = vadd.f32 %v2339_v15, %v1042_v13 }
 0x266   : > { %v1022_v14 = vpop.f32.mrf.mxu1  ;;  %v1067_v55 = vmax.f32 %v1043_v29, 0.0 }
 0x267   : > { %v1023_v32 = vadd.f32 %v2339_v15, %v1022_v14 }
 0x268   : > { %v1296_v51 = vsel %vm292_vm1, %v1067_v55, -inf }
 0x269   : > { %v1059_v43 = vmax.f32 %v1023_v32, 0.0  ;;  %v1297_v62 = vrot.slane %v1296_v51, 4 }
 0x26b   : > { %v1044_v17 = vpop.f32.mrf.mxu3  ;;  %v1240_v58 = vsel %vm292_vm1, %v1059_v43, -inf  ;;  %v1298_v13 = vmax.f32 %v1296_v51, %v1297_v62  ;;  %v1294_v43 = vrot.slane %v1293_v26, 1 }
 0x26c   : > { %v1045_v34 = vadd.f32 %v2339_v15, %v1044_v17  ;;  %v1241_v4 = vrot.slane %v1240_v58, 4  ;;  %v1231_v17 = vrot.slane %v1230_v3, 1 }
 0x26e   : > { %v1024_v19 = vpop.f32.mrf.mxu1  ;;  %v1068_v46 = vmax.f32 %v1045_v34, 0.0  ;;  %v1242_v18 = vmax.f32 %v1240_v58, %v1241_v4  ;;  %v2369_v34 = vmax.f32 %v1230_v3, %v1231_v17  ;;  %v1238_v58 = vrot.slane %v1237_v38, 1 }
 0x26f   : > { %v1025_v36 = vadd.f32 %v2339_v15, %v1024_v19 }
 0x270   : > { %v1303_v60 = vsel %vm292_vm1, %v1068_v46, -inf  ;;  %v1243_v35 = vrot.slane %v1242_v18, 2 }
 0x271   : > { %v1060_v47 = vmax.f32 %v1025_v36, 0.0  ;;  %v1304_v8 = vrot.slane %v1303_v60, 4 }
 0x273   : > { %v1247_v63 = vsel %vm292_vm1, %v1060_v47, -inf  ;;  %v1305_v24 = vmax.f32 %v1303_v60, %v1304_v8 }
 0x274   : > { %v1248_v11 = vrot.slane %v1247_v63, 4 }
 0x275   : > { %v1306_v55 = vrot.slane %v1305_v24, 2 }
 0x27a   : > { %v1047_v27 = vpop.f32.mrf.mxu3 }
 0x27b   : > { %v1027_v30 = vpop.f32.mrf.mxu1  ;;  %v1048_v37 = vadd.f32 %v2339_v15, %v1047_v27  ;;  %v1249_v27 = vmax.f32 %v1247_v63, %v1248_v11 }
 0x27c   : > { %v1028_v40 = vadd.f32 %v2339_v15, %v1027_v30  ;;  %v1299_v30 = vrot.slane %v1298_v13, 2 }
 0x27d   : > { %v1069_v48 = vmax.f32 %v1048_v37, 0.0  ;;  %v1250_v44 = vrot.slane %v1249_v27, 2 }
 0x27e   : > { %v1061_v52 = vmax.f32 %v1028_v40, 0.0  ;;  %v1300_v47 = vmax.f32 %v1298_v13, %v1299_v30  ;;  %v1295_v13 = vmax.f32 %v1293_v26, %v1294_v43 }
 0x27f   : > { %v1310_v0 = vsel %vm292_vm1, %v1069_v48, -inf }
 0x280   : > { %v1254_v2 = vsel %vm292_vm1, %v1061_v52, -inf  ;;  %v1311_v12 = vrot.slane %v1310_v0, 4  ;;  %v1244_v52 = vmax.f32 %v1242_v18, %v1243_v35  ;;  %v1361_v30 = vsel %vm1201_vm4, %v1295_v13, %v2366_v22 }
 0x281   : > { %v1255_v14 = vrot.slane %v1254_v2, 4 }
 0x282   : > { %v1049_v49 = vpop.f32.mrf.mxu3  ;;  %v1312_v28 = vmax.f32 %v1310_v0, %v1311_v12 }
 0x283   : > { %v1050_v53 = vadd.f32 %v2339_v15, %v1049_v49  ;;  %v1029_v54 = vpop.f32.mrf.mxu1  ;;  %v1256_v31 = vmax.f32 %v1254_v2, %v1255_v14 }
 0x284   : > { %v1030_v42 = vadd.f32 %v2339_v15, %v1029_v54  ;;  %v1313_v45 = vrot.slane %v1312_v28, 2 }
 0x285   : > { %v1070_v61 = vmax.f32 %v1050_v53, 0.0  ;;  %v1257_v48 = vrot.slane %v1256_v31, 2 }
 0x286   : > { %v1062_v1 = vmax.f32 %v1030_v42, 0.0  ;;  %v1307_v42 = vmax.f32 %v1305_v24, %v1306_v55  ;;  %v1314_v62 = vmax.f32 %v1312_v28, %v1313_v45 }
 0x287   : > { %v1317_v5 = vsel %vm292_vm1, %v1070_v61, -inf  ;;  %v1251_v61 = vmax.f32 %v1249_v27, %v1250_v44  ;;  %v1258_v3 = vmax.f32 %v1256_v31, %v1257_v48 }
 0x288   : > { %v1261_v9 = vsel %vm292_vm1, %v1062_v1, -inf  ;;  %v1318_v16 = vrot.slane %v1317_v5, 4  ;;  %v1301_v1 = vrot.slane %v1300_v47, 1  ;;  %v1315_v14 = vrot.slane %v1314_v62, 1 }
 0x289   : > { %v1262_v19 = vrot.slane %v1261_v9, 4  ;;  %v1259_v17 = vrot.slane %v1258_v3, 1 }
 0x28a   : > { %v1052_v39 = vpop.f32.mrf.mxu3  ;;  %v1319_v32 = vmax.f32 %v1317_v5, %v1318_v16  ;;  %v1245_v5 = vrot.slane %v1244_v52, 1  ;;  %v1316_v26 = vmax.f32 %v1314_v62, %v1315_v14 }
 0x28b   : > { %v1053_v20 = vadd.f32 %v2339_v15, %v1052_v39  ;;  %v1032_v21 = vpop.f32.mrf.mxu1  ;;  %v1263_v36 = vmax.f32 %v1261_v9, %v1262_v19  ;;  %v1308_v9 = vrot.slane %v1307_v42, 1  ;;  %v1239_v39 = vmax.f32 %v1237_v38, %v1238_v58 }
 0x28c   : > { %v1033_v25 = vadd.f32 %v2339_v15, %v1032_v21  ;;  %v1320_v49 = vrot.slane %v1319_v32, 2  ;;  %v1260_v35 = vmax.f32 %v1258_v3, %v1259_v17 }
 0x28d   : > { %v1071_v29 = vmax.f32 %v1053_v20, 0.0  ;;  %v1264_v53 = vrot.slane %v1263_v36, 2  ;;  %v1302_v20 = vmax.f32 %v1300_v47, %v1301_v1  ;;  %v1309_v27 = vmax.f32 %v1307_v42, %v1308_v9 }
 0x28e   : > { %v1063_v33 = vmax.f32 %v1033_v25, 0.0  ;;  %v1321_v4 = vmax.f32 %v1319_v32, %v1320_v49  ;;  %v1246_v25 = vmax.f32 %v1244_v52, %v1245_v5 }
 0x28f   : > { %v1324_v37 = vsel %vm292_vm1, %v1071_v29, -inf  ;;  %v1265_v6 = vmax.f32 %v1263_v36, %v1264_v53  ;;  %v1362_v38 = vsel %vm1203_vm5, %v1302_v20, %v1361_v30 }
 0x290   : > { %v1325_v40 = vrot.slane %v1324_v37, 4  ;;  %v1268_v41 = vsel %vm292_vm1, %v1063_v33, -inf  ;;  %v1322_v18 = vrot.slane %v1321_v4, 1  ;;  %v1354_v33 = vsel %vm1201_vm4, %v1239_v39, %v2369_v34 }
 0x291   : > { %v1269_v46 = vrot.slane %v1268_v41, 4  ;;  %v1266_v21 = vrot.slane %v1265_v6, 1  ;;  %v1355_v43 = vsel %vm1203_vm5, %v1246_v25, %v1354_v33  ;;  %v1363_v22 = vsel %vm1205_vm6, %v1309_v27, %v1362_v38 }
 0x292   : > { %v1326_v50 = vmax.f32 %v1324_v37, %v1325_v40  ;;  %v1054_v51 = vpop.f32.mrf.mxu3  ;;  %v1323_v36 = vmax.f32 %v1321_v4, %v1322_v18  ;;  %v1364_v47 = vsel %vm1207_vm7, %v1316_v26, %v1363_v22 }
 0x293   : > { %v1270_v54 = vmax.f32 %v1268_v41, %v1269_v46  ;;  %v1055_v56 = vadd.f32 %v2339_v15, %v1054_v51  ;;  %v1034_v57 = vpop.f32.mrf.mxu1  ;;  %v1267_v55 = vmax.f32 %v1265_v6, %v1266_v21 }
 0x294   : > { %v1327_v59 = vrot.slane %v1326_v50, 2  ;;  %v1035_v60 = vadd.f32 %v2339_v15, %v1034_v57  ;;  %v1252_v15 = vrot.slane %v1251_v61, 1  ;;  %v1365_v49 = vsel %vm1209_vm8, %v1323_v36, %v1364_v47 }
 0x295   : > { %v1271_v63 = vrot.slane %v1270_v54, 2  ;;  %v1072_v0 = vmax.f32 %v1055_v56, 0.0 }
 0x296   : > { %v1064_v2 = vmax.f32 %v1035_v60, 0.0  ;;  %v1328_v7 = vmax.f32 %v1326_v50, %v1327_v59  ;;  %v1253_v31 = vmax.f32 %v1251_v61, %v1252_v15 }
 0x297   : > { %v1331_v8 = vsel %vm292_vm1, %v1072_v0, -inf  ;;  %v1272_v10 = vmax.f32 %v1270_v54, %v1271_v63 }
 0x298   : > { %v1332_v11 = vrot.slane %v1331_v8, 4  ;;  %v1275_v12 = vsel %vm292_vm1, %v1064_v2, -inf  ;;  %v1329_v23 = vrot.slane %v1328_v7, 1  ;;  %v1356_v34 = vsel %vm1205_vm6, %v1253_v31, %v1355_v43 }
 0x299   : > { %v1276_v16 = vrot.slane %v1275_v12, 4  ;;  %v1273_v28 = vrot.slane %v1272_v10, 1  ;;  %v1357_v50 = vsel %vm1207_vm7, %v1260_v35, %v1356_v34 }
 0x29a   : > { %v1333_v19 = vmax.f32 %v1331_v8, %v1332_v11  ;;  %v1330_v40 = vmax.f32 %v1328_v7, %v1329_v23  ;;  %v1358_v53 = vsel %vm1209_vm8, %v1267_v55, %v1357_v50 }
 0x29b   : > { %v1277_v24 = vmax.f32 %v1275_v12, %v1276_v16  ;;  %v1274_v44 = vmax.f32 %v1272_v10, %v1273_v28 }
 0x29c   : > { %v1334_v29 = vrot.slane %v1333_v19, 2  ;;  %v1366_v51 = vsel %vm1211_vm9, %v1330_v40, %v1365_v49 }
 0x29d   : > { %v1278_v32 = vrot.slane %v1277_v24, 2  ;;  %v1359_v56 = vsel %vm1211_vm9, %v1274_v44, %v1358_v53 }
 0x29e   : > { %v1335_v37 = vmax.f32 %v1333_v19, %v1334_v29 }
 0x29f   : > { %v1279_v41 = vmax.f32 %v1277_v24, %v1278_v32 }
 0x2a0   : > { %v1336_v45 = vrot.slane %v1335_v37, 1 }
 0x2a1   : > { %v1280_v46 = vrot.slane %v1279_v41, 1 }
 0x2a2   : > { %v1337_v48 = vmax.f32 %v1335_v37, %v1336_v45 }
 0x2a3   : > { %v1281_v52 = vmax.f32 %v1279_v41, %v1280_v46 }
 0x2a4   : > { %v1367_v54 = vsel %vm1213_vm10, %v1337_v48, %v1366_v51 }
 0x2a5   : > { %1370 = vrot.lane.b32.xlu0 %v1367_v54, %s1866_s11  ;;  %v1360_v57 = vsel %vm1213_vm10, %v1281_v52, %v1359_v56 }
 0x2a6   : > { %1368 = vrot.lane.b32.xlu2 %v1360_v57, %s1866_s11 }
 0x300   : > { %v1369_v58 = vpop.permute.xlu2 %1368 }
 0x301   : > { %1375 = vst.msk [vmem:[%s2278_s26] sm:$0xff] %vm1374_vm11, %v1369_v58 }
 0x317   : > { %v1371_v42 = vpop.permute.xlu0 %1370 }
 0x318   : > { %1376 = vst.msk [vmem:[%s2278_s26 + $0x8] sm:$0xff] %vm1374_vm11, %v1371_v42 }
 0x319   : > { %1828 = shalt.err (!%p1825_p3)
}
 0x31a   : > { %s1868_s23 = smov 128   ;;  %s1869_s26 = smov 8  }
 0x31b   : > { %1595 = dma.vmem_to_hbm [thread:$0]  (%p1935_p5), %s1391_s22, 256, %s1393_s25, %s1378_s6, %s1868_s23, %s1868_s23, %s1869_s26  }
 0x31c PF: > { %p1601_p4 = scmp.ge.s32.totalorder %s1863_s21, 2  ;;  %s1407_s12 = sand.u32 1, %s1851_s18  }
 0x31d   : > { %s1408_s14 = scalar_lea.sflag [#allocation5], %s1407_s12 }
 0x31e   : > { %p1598_p7 = pnand %p1601_p4, %p1939_p6 }
 0x320   : > { %p1599_p8 = pneg %p1598_p7 }
 0x322   : > { %1846 = dma.done.wait (%p1599_p8), %s1408_s14, 256  }
 0x323   : > { %1848 = vsyncadd (%p1599_p8), %s1408_s14, 4294967040  ;;  %p15_p9 = scmp.ge.s32.totalorder %s1923_s24, 4   ;;  %s2439_s18 = smov %s1855_s19 }
 0x324   : > { %s2440_s19 = smov %s1859_s20  ;;  %s2441_s20 = smov %s1933_s27 }
 0x325   : > { %s2442_s21 = smov %s1923_s24  ;;  %17 = sbr.rel (!%p15_p9) target bundleno = 3 (0x3), region = 75 }
 0x32a   :  { %1414 = vsyncpa [#allocation5], 1 }
 0x32b   :  { %1416 = vsyncpa [#allocation5 + $0x1], 1 }

</bundles_post_ra>
